<compile_context>
chip_gen: v7x
topology: tpu7x:2x2x1
jax: 0.10.0
libtpu: 0.0.40
codegen_flags: <defaults>
</compile_context>

<pallas_src>
import functools

import jax
import jax.numpy as jnp
from jax import lax
from jax.experimental import pallas as pl
from jax.experimental.pallas import tpu as pltpu


# ---------------------------------------------------------------------------
# Helpers
# ---------------------------------------------------------------------------
def _round_up(n, m):
    return ((n + m - 1) // m) * m


def _vmem_limit_bytes():
    # 128 MiB physical VMEM on v5e/v6e, 64 MiB per TensorCore on v7x.
    # Use ~75% of capacity, capped at 96 MiB; conservative 48 MiB fallback.
    try:
        cap = int(pltpu.get_tpu_info().vmem_capacity_bytes)
        return max(32 * 1024 * 1024, min((cap * 3) // 4, 96 * 1024 * 1024))
    except Exception:
        return 48 * 1024 * 1024


def _pick_row_tile(n_pad):
    # Prefer >= 2 row blocks so the "parallel" axis can shard across both
    # TensorCores on v7x.
    for c in (512, 256, 128):
        if n_pad % c == 0 and n_pad // c >= 2:
            return c
    return n_pad  # tiny graph: single row block


def _pick_k_tile(n_pad):
    # Largest multiple of 256 that divides n_pad and is <= 4096.
    c = (min(4096, n_pad) // 256) * 256
    while c >= 256:
        if n_pad % c == 0:
            return c
        c -= 256
    return n_pad


def _pad2d(x, rows, cols, dtype):
    out = jnp.pad(x, ((0, rows - x.shape[0]), (0, cols - x.shape[1])))
    return out.astype(dtype)


# ---------------------------------------------------------------------------
# Pallas kernel: tiled GCN propagation  out = [relu](A_hat @ Z + b)
# A_hat is formed in-kernel: dinv[row] * counts * dinv[col]  (VPU, free).
# ---------------------------------------------------------------------------
def gcn_propagate_kernel(a_ref, dr_ref, dc_ref, z_ref, b_ref, o_ref, acc_ref,
                         *, apply_relu, k_tile, z_is_resident):
    k = pl.program_id(1)

    # Symmetric normalization on the VPU (bf16 MXU operand out).
    a = (a_ref[...].astype(jnp.float32) * dr_ref[...] * dc_ref[...]).astype(z_ref.dtype)

    if z_is_resident:
        start = pl.multiple_of(k * k_tile, k_tile)
        z = z_ref[pl.ds(start, k_tile), :]
    else:
        z = z_ref[...]

    part = jnp.dot(a, z, preferred_element_type=jnp.float32)

    @pl.when(k == 0)
    def _():
        acc_ref[...] = part          # direct write, no zero-init pass

    @pl.when(k > 0)
    def _():
        acc_ref[...] += part

    @pl.when(k == pl.num_programs(1) - 1)
    def _():
        out = acc_ref[...] + b_ref[...]          # f32 epilogue (v5e-safe)
        if apply_relu:
            out = jnp.maximum(out, 0.0)
        o_ref[...] = out.astype(o_ref.dtype)


def _propagate(a_pad, dinv_row, dinv_col, z_pad, bias_pad, *, apply_relu,
               out_dtype, row_tile=None, k_tile=None, z_resident=None):
    """out[N_pad, D_pad] = [relu](A_hat @ Z_pad + bias) via a tiled pallas_call."""
    n_pad = a_pad.shape[0]
    d_pad = z_pad.shape[1]

    tm = row_tile if row_tile is not None else _pick_row_tile(n_pad)
    tk = k_tile if k_tile is not None else _pick_k_tile(n_pad)
    assert n_pad % tm == 0 and n_pad % tk == 0
    grid = (n_pad // tm, n_pad // tk)

    z_bytes = z_pad.size * z_pad.dtype.itemsize
    if z_resident is None:
        # Keep Z resident in VMEM (fetched once) unless it would eat the budget.
        z_resident = 2 * z_bytes <= 8 * 1024 * 1024

    if z_resident:
        z_spec = pl.BlockSpec((n_pad, d_pad), lambda i, k: (0, 0))   # fetched once
    else:
        z_spec = pl.BlockSpec((tk, d_pad), lambda i, k: (k, 0))      # streamed

    kernel = functools.partial(gcn_propagate_kernel, apply_relu=apply_relu,
                               k_tile=tk, z_is_resident=z_resident)

    flops = 2 * n_pad * n_pad * d_pad
    bytes_accessed = (
        a_pad.size * a_pad.dtype.itemsize
        + (1 if z_resident else grid[0]) * z_bytes
        + n_pad * d_pad * jnp.dtype(out_dtype).itemsize
        + (dinv_row.size + grid[0] * dinv_col.size + bias_pad.size) * 4
    )

    return pl.pallas_call(
        kernel,
        out_shape=jax.ShapeDtypeStruct((n_pad, d_pad), out_dtype),
        grid_spec=pltpu.PrefetchScalarGridSpec(
            num_scalar_prefetch=0,
            grid=grid,
            in_specs=[
                pl.BlockSpec((tm, tk), lambda i, k: (i, k)),      # raw counts tile
                pl.BlockSpec((tm, 1), lambda i, k: (i, 0)),       # dinv rows (f32)
                pl.BlockSpec((1, tk), lambda i, k: (0, k)),       # dinv cols (f32)
                z_spec,                                           # Z
                pl.BlockSpec((1, d_pad), lambda i, k: (0, 0)),    # bias (f32)
            ],
            out_specs=pl.BlockSpec((tm, d_pad), lambda i, k: (i, 0)),
            scratch_shapes=[pltpu.VMEM((tm, d_pad), jnp.float32)],
        ),
        compiler_params=pltpu.CompilerParams(
            dimension_semantics=("parallel", "arbitrary"),
            vmem_limit_bytes=_vmem_limit_bytes(),
        ),
        cost_estimate=pl.CostEstimate(
            flops=flops, transcendentals=0, bytes_accessed=bytes_accessed),
    )(a_pad, dinv_row, dinv_col, z_pad, bias_pad)


# ---------------------------------------------------------------------------
# Pallas kernel: fused both-layer forward (A_hat resident, read from HBM once)
# ---------------------------------------------------------------------------
def gcn_fused_kernel(a_ref, dr_ref, dc_ref, xw1_ref, w2_ref, b1_ref, b2_ref, o_ref):
    cd = xw1_ref.dtype
    a = (a_ref[...].astype(jnp.float32) * dr_ref[...] * dc_ref[...]).astype(cd)
    h = jnp.dot(a, xw1_ref[...], preferred_element_type=jnp.float32) + b1_ref[...]
    h = jnp.maximum(h, 0.0).astype(cd)
    hw2 = jnp.dot(h, w2_ref[...], preferred_element_type=jnp.float32).astype(cd)
    out = jnp.dot(a, hw2, preferred_element_type=jnp.float32) + b2_ref[...]
    o_ref[...] = out.astype(o_ref.dtype)


def _fused_forward(a_pad, dinv_row, dinv_col, xw1_pad, w2_pad, b1_pad, b2_pad,
                   *, out_dtype):
    n_pad = a_pad.shape[0]
    dh_pad = xw1_pad.shape[1]
    dout_pad = w2_pad.shape[1]

    def full_spec(arr):
        return pl.BlockSpec(arr.shape, lambda i: (0, 0))

    operands = (a_pad, dinv_row, dinv_col, xw1_pad, w2_pad, b1_pad, b2_pad)
    flops = (2 * n_pad * n_pad * (dh_pad + dout_pad)
             + 2 * n_pad * dh_pad * dout_pad)
    bytes_accessed = (sum(o.size * o.dtype.itemsize for o in operands)
                      + n_pad * dout_pad * jnp.dtype(out_dtype).itemsize)

    return pl.pallas_call(
        gcn_fused_kernel,
        out_shape=jax.ShapeDtypeStruct((n_pad, dout_pad), out_dtype),
        grid=(1,),
        in_specs=[full_spec(o) for o in operands],
        out_specs=pl.BlockSpec((n_pad, dout_pad), lambda i: (0, 0)),
        compiler_params=pltpu.CompilerParams(
            dimension_semantics=("arbitrary",),
            vmem_limit_bytes=_vmem_limit_bytes(),
        ),
        cost_estimate=pl.CostEstimate(
            flops=flops, transcendentals=0, bytes_accessed=bytes_accessed),
    )(*operands)


# ---------------------------------------------------------------------------
# Plain-JAX glue
# ---------------------------------------------------------------------------
def build_graph_operands(edge_index, num_nodes):
    """Raw scatter-built (A + I) edge counts in PyG convention
    (row = target node, duplicate edges accumulate) and D^-1/2 vector."""
    src, dst = edge_index[0], edge_index[1]
    loops = jnp.arange(num_nodes, dtype=src.dtype)
    src = jnp.concatenate([src, loops])
    dst = jnp.concatenate([dst, loops])
    counts = jnp.zeros((num_nodes, num_nodes), jnp.float32).at[dst, src].add(1.0)
    deg = jnp.sum(counts, axis=1)                       # in-degree incl. self loop
    dinv = jnp.where(deg > 0, lax.rsqrt(deg), 0.0)
    return counts, dinv


def gcn_model_forward(x, edge_index, params, *, compute_dtype=jnp.bfloat16,
                      use_fused=None, row_tile=None, k_tile=None, z_resident=None):
    n = x.shape[0]
    w1, b1, w2, b2 = params["w1"], params["b1"], params["w2"], params["b2"]
    dh, dout = w1.shape[1], w2.shape[1]

    counts, dinv = build_graph_operands(edge_index, n)

    # Pad N to a tile-friendly multiple so tile selection never degrades.
    n_pad = _round_up(n, 256) if n <= 512 else _round_up(n, 512)
    dh_pad = _round_up(dh, 128)
    dout_pad = _round_up(dout, 128)

    # Raw counts travel as bf16 (exact for small integer multiplicities); the
    # symmetric normalization happens on the VPU inside the kernel.
    a_pad = _pad2d(counts, n_pad, n_pad, compute_dtype)
    dr = _pad2d(dinv.reshape(-1, 1), n_pad, 1, jnp.float32)
    dc = _pad2d(dinv.reshape(1, -1), 1, n_pad, jnp.float32)

    # Tiny per-node feature transform, hoisted to plain JAX.
    xw1 = jnp.dot(x, w1, preferred_element_type=jnp.float32)
    xw1_pad = _pad2d(xw1.astype(compute_dtype), n_pad, dh_pad, compute_dtype)
    b1_pad = _pad2d(b1.reshape(1, -1), 1, dh_pad, jnp.float32)
    b2_pad = _pad2d(b2.reshape(1, -1), 1, dout_pad, jnp.float32)

    if use_fused is None:
        # Fused path keeps A_hat resident in VMEM and reads it from HBM once
        # for both layers; gate on a size that fits v7x's 64 MiB/TC VMEM.
        use_fused = n_pad <= 1024

    if use_fused:
        w2_pad = _pad2d(w2.astype(compute_dtype), dh_pad, dout_pad, compute_dtype)
        out_pad = _fused_forward(a_pad, dr, dc, xw1_pad, w2_pad, b1_pad, b2_pad,
                                 out_dtype=jnp.float32)
        return out_pad[:n, :dout]

    # ---- Layer 1: H = relu(A_hat @ (x @ W1) + b1) ----
    h_pad = _propagate(a_pad, dr, dc, xw1_pad, b1_pad, apply_relu=True,
                       out_dtype=compute_dtype, row_tile=row_tile,
                       k_tile=k_tile, z_resident=z_resident)

    # ---- Layer 2: out = A_hat @ (H @ W2) + b2 ----
    hw2 = jnp.dot(h_pad[:, :dh], w2.astype(compute_dtype),
                  preferred_element_type=jnp.float32)
    hw2_pad = _pad2d(hw2.astype(compute_dtype), n_pad, dout_pad, compute_dtype)
    out_pad = _propagate(a_pad, dr, dc, hw2_pad, b2_pad, apply_relu=False,
                         out_dtype=jnp.float32, row_tile=row_tile,
                         k_tile=k_tile, z_resident=z_resident)
    return out_pad[:n, :dout]


# ---------------------------------------------------------------------------
# References
# ---------------------------------------------------------------------------
def reference_forward_matched(x, edge_index, params, compute_dtype=jnp.bfloat16):
    """Same math / same precision path (bf16 MXU operands, f32 accumulation)."""
    w1, b1, w2, b2 = params["w1"], params["b1"], params["w2"], params["b2"]
    counts, dinv = build_graph_operands(edge_index, x.shape[0])
    a = (dinv[:, None] * counts * dinv[None, :]).astype(compute_dtype)
    xw1 = jnp.dot(x, w1, preferred_element_type=jnp.float32).astype(compute_dtype)
    h = jnp.dot(a, xw1, preferred_element_type=jnp.float32) + b1
    h = jnp.maximum(h, 0.0).astype(compute_dtype)
    hw2 = jnp.dot(h, w2.astype(compute_dtype),
                  preferred_element_type=jnp.float32).astype(compute_dtype)
    return jnp.dot(a, hw2, preferred_element_type=jnp.float32) + b2


def reference_forward_f32(x, edge_index, params):
    counts, dinv = build_graph_operands(edge_index, x.shape[0])
    a = dinv[:, None] * counts * dinv[None, :]
    h = jnp.maximum(a @ (x @ params["w1"]) + params["b1"], 0.0)
    return a @ (h @ params["w2"]) + params["b2"]


# ---------------------------------------------------------------------------
if __name__ == "__main__":
    key = jax.random.PRNGKey(0)
    k_x, k_e, k_w1, k_b1, k_w2, k_b2 = jax.random.split(key, 6)

    num_nodes = 16
    num_edges = 40
    input_dim, hidden_dim, output_dim = 8, 32, 16

    x = jax.random.normal(k_x, (num_nodes, input_dim), dtype=jnp.float32)
    edge_index = jax.random.randint(k_e, (2, num_edges), 0, num_nodes,
                                    dtype=jnp.int32)

    params = {
        "w1": jax.random.normal(k_w1, (input_dim, hidden_dim), jnp.float32)
        * (1.0 / jnp.sqrt(input_dim)),
        "b1": jax.random.normal(k_b1, (hidden_dim,), jnp.float32) * 0.01,
        "w2": jax.random.normal(k_w2, (hidden_dim, output_dim), jnp.float32)
        * (1.0 / jnp.sqrt(hidden_dim)),
        "b2": jax.random.normal(k_b2, (output_dim,), jnp.float32) * 0.01,
    }

    ref = reference_forward_matched(x, edge_index, params)
    ref32 = reference_forward_f32(x, edge_index, params)

    # 1) Default path: fused single-call kernel (A_hat read from HBM once).
    out = jax.block_until_ready(jax.jit(gcn_model_forward)(x, edge_index, params))
    assert out.shape == (num_nodes, output_dim)
    assert jnp.allclose(out, ref, atol=1e-3, rtol=1e-3), "fused: mismatch vs matched ref"
    assert jnp.allclose(out, ref32, atol=2e-1, rtol=1e-1), "fused: mismatch vs f32 ref"

    # 2) Tiled per-layer path (resident Z, single k step).
    fwd_tiled = jax.jit(functools.partial(gcn_model_forward, use_fused=False))
    out_tiled = jax.block_until_ready(fwd_tiled(x, edge_index, params))
    assert jnp.allclose(out_tiled, ref, atol=1e-3, rtol=1e-3), "tiled: mismatch vs ref"

    # 3) Tiled path with forced small tiles + streamed Z, exercising the
    #    multi-step k accumulation and the streaming branch.
    fwd_multi = jax.jit(functools.partial(gcn_model_forward, use_fused=False,
                                          row_tile=128, k_tile=128,
                                          z_resident=False))
    out_multi = jax.block_until_ready(fwd_multi(x, edge_index, params))
    assert jnp.allclose(out_multi, ref, atol=1e-3, rtol=1e-3), "multi-k: mismatch vs ref"

    print("KERNEL_OK")
</pallas_src>

<mosaic_0001>
module attributes {stable_mosaic.version = 11 : i64} {
  func.func @gcn_fused_kernel(%arg0: i32, %arg1: memref<256x256xbf16, #tpu.memory_space<vmem>>, %arg2: memref<256x1xf32, #tpu.memory_space<vmem>>, %arg3: memref<1x256xf32, #tpu.memory_space<vmem>>, %arg4: memref<256x128xbf16, #tpu.memory_space<vmem>>, %arg5: memref<128x128xbf16, #tpu.memory_space<vmem>>, %arg6: memref<1x128xf32, #tpu.memory_space<vmem>>, %arg7: memref<1x128xf32, #tpu.memory_space<vmem>>, %arg8: memref<256x128xf32, #tpu.memory_space<vmem>>) attributes {dimension_semantics = [#tpu.dimension_semantics<arbitrary>], iteration_bounds = array<i64: 1>, scalar_prefetch = 0 : i64, scratch_operands = 0 : i64, tpu.core_type = #tpu.core_type<tc>, window_params = [{pipeline_mode = #tpu.pipeline_mode<synchronous>, transform_indices = @transform_0, window_bounds = array<i64: 256, 256>}, {pipeline_mode = #tpu.pipeline_mode<synchronous>, transform_indices = @transform_1, window_bounds = array<i64: 256, 1>}, {pipeline_mode = #tpu.pipeline_mode<synchronous>, transform_indices = @transform_2, window_bounds = array<i64: 1, 256>}, {pipeline_mode = #tpu.pipeline_mode<synchronous>, transform_indices = @transform_3, window_bounds = array<i64: 256, 128>}, {pipeline_mode = #tpu.pipeline_mode<synchronous>, transform_indices = @transform_4, window_bounds = array<i64: 128, 128>}, {pipeline_mode = #tpu.pipeline_mode<synchronous>, transform_indices = @transform_5, window_bounds = array<i64: 1, 128>}, {pipeline_mode = #tpu.pipeline_mode<synchronous>, transform_indices = @transform_6, window_bounds = array<i64: 1, 128>}, {pipeline_mode = #tpu.pipeline_mode<synchronous>, transform_indices = @transform_7, window_bounds = array<i64: 256, 128>}]} {
    %c0 = arith.constant 0 : index
    %c0_0 = arith.constant 0 : index
    %0 = vector.load %arg1[%c0, %c0_0] : memref<256x256xbf16, #tpu.memory_space<vmem>>, vector<256x256xbf16>
    %1 = arith.extf %0 : vector<256x256xbf16> to vector<256x256xf32>
    %c0_1 = arith.constant 0 : index
    %c0_2 = arith.constant 0 : index
    %2 = vector.load %arg2[%c0_1, %c0_2] : memref<256x1xf32, #tpu.memory_space<vmem>>, vector<256x1xf32>
    %3 = vector.broadcast %2 : vector<256x1xf32> to vector<256x256xf32>
    %4 = arith.mulf %1, %3 : vector<256x256xf32>
    %c0_3 = arith.constant 0 : index
    %c0_4 = arith.constant 0 : index
    %5 = vector.load %arg3[%c0_3, %c0_4] : memref<1x256xf32, #tpu.memory_space<vmem>>, vector<1x256xf32>
    %6 = vector.broadcast %5 : vector<1x256xf32> to vector<256x256xf32>
    %7 = arith.mulf %4, %6 : vector<256x256xf32>
    %8 = arith.truncf %7 : vector<256x256xf32> to vector<256x256xbf16>
    %c0_5 = arith.constant 0 : index
    %c0_6 = arith.constant 0 : index
    %9 = vector.load %arg4[%c0_5, %c0_6] : memref<256x128xbf16, #tpu.memory_space<vmem>>, vector<256x128xbf16>
    %cst = arith.constant dense<0.000000e+00> : vector<256x128xf32>
    %10 = tpu.matmul %8, %9, %cst {dimension_numbers = #tpu.dot_dimension_numbers<[1], [0], [0], [1], [0, 0, 1, 1], [], []>} : vector<256x256xbf16>, vector<256x128xbf16>, vector<256x128xf32> -> vector<256x128xf32>
    %c0_7 = arith.constant 0 : index
    %c0_8 = arith.constant 0 : index
    %11 = vector.load %arg6[%c0_7, %c0_8] : memref<1x128xf32, #tpu.memory_space<vmem>>, vector<1x128xf32>
    %12 = vector.broadcast %11 : vector<1x128xf32> to vector<256x128xf32>
    %13 = arith.addf %10, %12 : vector<256x128xf32>
    %cst_9 = arith.constant 0.000000e+00 : f32
    %14 = vector.broadcast %cst_9 : f32 to vector<256x128xf32>
    %15 = arith.maximumf %13, %14 : vector<256x128xf32>
    %16 = arith.truncf %15 : vector<256x128xf32> to vector<256x128xbf16>
    %c0_10 = arith.constant 0 : index
    %c0_11 = arith.constant 0 : index
    %17 = vector.load %arg5[%c0_10, %c0_11] : memref<128x128xbf16, #tpu.memory_space<vmem>>, vector<128x128xbf16>
    %cst_12 = arith.constant dense<0.000000e+00> : vector<256x128xf32>
    %18 = tpu.matmul %16, %17, %cst_12 {dimension_numbers = #tpu.dot_dimension_numbers<[1], [0], [0], [1], [0, 0, 1, 1], [], []>} : vector<256x128xbf16>, vector<128x128xbf16>, vector<256x128xf32> -> vector<256x128xf32>
    %19 = arith.truncf %18 : vector<256x128xf32> to vector<256x128xbf16>
    %cst_13 = arith.constant dense<0.000000e+00> : vector<256x128xf32>
    %20 = tpu.matmul %8, %19, %cst_13 {dimension_numbers = #tpu.dot_dimension_numbers<[1], [0], [0], [1], [0, 0, 1, 1], [], []>} : vector<256x256xbf16>, vector<256x128xbf16>, vector<256x128xf32> -> vector<256x128xf32>
    %c0_14 = arith.constant 0 : index
    %c0_15 = arith.constant 0 : index
    %21 = vector.load %arg7[%c0_14, %c0_15] : memref<1x128xf32, #tpu.memory_space<vmem>>, vector<1x128xf32>
    %22 = vector.broadcast %21 : vector<1x128xf32> to vector<256x128xf32>
    %23 = arith.addf %20, %22 : vector<256x128xf32>
    %c0_16 = arith.constant 0 : index
    %c0_17 = arith.constant 0 : index
    %24 = vector.load %arg8[%c0_16, %c0_17] : memref<256x128xf32, #tpu.memory_space<vmem>>, vector<256x128xf32>
    tpu.vector_store %arg8[%c0_16, %c0_17], %23 {strides = array<i32>} : memref<256x128xf32, #tpu.memory_space<vmem>>, vector<256x128xf32>,
    return
  }
  func.func @transform_0(%arg0: i32) -> (i32, i32) {
    %c0_i32 = arith.constant 0 : i32
    %c0_i32_0 = arith.constant 0 : i32
    %c0_i32_1 = arith.constant 0 : i32
    return %c0_i32, %c0_i32_0 : i32, i32
  }
  func.func @transform_1(%arg0: i32) -> (i32, i32) {
    %c0_i32 = arith.constant 0 : i32
    %c0_i32_0 = arith.constant 0 : i32
    %c0_i32_1 = arith.constant 0 : i32
    return %c0_i32, %c0_i32_0 : i32, i32
  }
  func.func @transform_2(%arg0: i32) -> (i32, i32) {
    %c0_i32 = arith.constant 0 : i32
    %c0_i32_0 = arith.constant 0 : i32
    %c0_i32_1 = arith.constant 0 : i32
    return %c0_i32, %c0_i32_0 : i32, i32
  }
  func.func @transform_3(%arg0: i32) -> (i32, i32) {
    %c0_i32 = arith.constant 0 : i32
    %c0_i32_0 = arith.constant 0 : i32
    %c0_i32_1 = arith.constant 0 : i32
    return %c0_i32, %c0_i32_0 : i32, i32
  }
  func.func @transform_4(%arg0: i32) -> (i32, i32) {
    %c0_i32 = arith.constant 0 : i32
    %c0_i32_0 = arith.constant 0 : i32
    %c0_i32_1 = arith.constant 0 : i32
    return %c0_i32, %c0_i32_0 : i32, i32
  }
  func.func @transform_5(%arg0: i32) -> (i32, i32) {
    %c0_i32 = arith.constant 0 : i32
    %c0_i32_0 = arith.constant 0 : i32
    %c0_i32_1 = arith.constant 0 : i32
    return %c0_i32, %c0_i32_0 : i32, i32
  }
  func.func @transform_6(%arg0: i32) -> (i32, i32) {
    %c0_i32 = arith.constant 0 : i32
    %c0_i32_0 = arith.constant 0 : i32
    %c0_i32_1 = arith.constant 0 : i32
    return %c0_i32, %c0_i32_0 : i32, i32
  }
  func.func @transform_7(%arg0: i32) -> (i32, i32) {
    %c0_i32 = arith.constant 0 : i32
    %c0_i32_0 = arith.constant 0 : i32
    %c0_i32_1 = arith.constant 0 : i32
    return %c0_i32, %c0_i32_0 : i32, i32
  }
}

</mosaic_0001>

<bundles_post_ra>
// kernel: gcn_model_forward.1
= control target key start
LH: loop header
LB: loop body
LE: loop exit
PB: predicated region body
PF: predicated region fallthrough
CT: control target
= control target key end

     0   :  { %v1641_v0 = vmov 0   ;;  %v381_v49 = vlaneseq  ;;  %s2525_s1 = inlined_call_operand.vmem [shape: f32[256,1], index: 1, kind: input, shape index: {}]   ;;  %s2526_s3 = inlined_call_operand.vmem [shape: bf16[256,128], index: 3, kind: input, shape index: {}]   ;;  %s2527_s0 = inlined_call_operand.vmem [shape: bf16[256,256], index: 0, kind: input, shape index: {}]   ;;  %s2528_s2 = inlined_call_operand.vmem [shape: f32[1,256], index: 2, kind: input, shape index: {}]   ;;  %s2529_s4 = inlined_call_operand.vmem [shape: bf16[128,128], index: 4, kind: input, shape index: {}]   ;;  %s2530_s5 = inlined_call_operand.vmem [shape: f32[1,128], index: 5, kind: input, shape index: {}]   ;;  %s2531_s6 = inlined_call_operand.vmem [shape: f32[1,128], index: 6, kind: input, shape index: {}]   ;;  %s2532_s7 = inlined_call_operand.vmem [shape: f32[256,128], index: 7, kind: output, shape index: {}]  }
   0x1   :  { %1616 = vset.pattern.permute.xlu1 %v1641_v0  ;;  %1615 = vset.pattern.permute.xlu0 %v1641_v0  ;;  %v125_v1 = vld [vmem:[%s2525_s1 + $0x10] sm:$0xff]  ;;  %v123_v2 = vld [vmem:[%s2525_s1] sm:$0xff]  ;;  %v126_v3 = vld [vmem:[%s2525_s1 + $0x18] sm:$0xff] }
   0x2   :  { %167 = vperm.xlu1 %1616, %v125_v1   ;;  %157 = vperm.xlu0 %1615, %v123_v2   ;;  %v124_v4 = vld [vmem:[%s2525_s1 + $0x8] sm:$0xff]  ;;  %v127_v6 = vld [vmem:[%s2525_s1 + $0x20] sm:$0xff]  ;;  %v130_v7 = vld [vmem:[%s2525_s1 + $0x38] sm:$0xff]  ;;  %v382_v51 = vshrl.u32 %v381_v49, 7 }
   0x3   :  { %v128_v5 = vld [vmem:[%s2525_s1 + $0x28] sm:$0xff]  ;;  %v129_v8 = vld [vmem:[%s2525_s1 + $0x30] sm:$0xff]  ;;  %v1617_v9 = vld [vmem:[%s2526_s3 + $0x40] sm:$0xff]  }
   0x4   :  { %v132_v10 = vld [vmem:[%s2525_s1 + $0x48] sm:$0xff]  ;;  %v1618_v11 = vld [vmem:[%s2526_s3] sm:$0xff]   ;;  %1302 = vmatprep.subr.bf16.mxu0 %v1617_v9  ;;  %v1621_v15 = vld [vmem:[%s2526_s3 + $0x50] sm:$0xff]   ;;  %v383_v56 = vsub.s32 0, %v382_v51  ;;  %v387_v57 = vsub.s32 1, %v382_v51 }
   0x5   :  { %v1619_v12 = vld [vmem:[%s2526_s3 + $0x48] sm:$0xff]   ;;  %v131_v13 = vld [vmem:[%s2525_s1 + $0x40] sm:$0xff]  ;;  %1303 = vmatpush3.bf16.msra.mxu0 %v1618_v11  ;;  %v134_v16 = vld [vmem:[%s2525_s1 + $0x58] sm:$0xff] }
   0x6   :  { %172 = vperm.xlu1 %1616, %v126_v3   ;;  %162 = vperm.xlu0 %1615, %v124_v4   ;;  %v1620_v14 = vld [vmem:[%s2526_s3 + $0x8] sm:$0xff]   ;;  %v133_v17 = vld [vmem:[%s2525_s1 + $0x50] sm:$0xff]  ;;  %v1623_v19 = vld [vmem:[%s2526_s3 + $0x58] sm:$0xff]  }
   0x7   :  { %1304 = vmatprep.subr.bf16.mxu0 %v1619_v12  ;;  %v1622_v18 = vld [vmem:[%s2526_s3 + $0x10] sm:$0xff]   ;;  %v136_v20 = vld [vmem:[%s2525_s1 + $0x68] sm:$0xff]  ;;  %v135_v21 = vld [vmem:[%s2525_s1 + $0x60] sm:$0xff] }
   0x8   :  { %v1624_v22 = vld [vmem:[%s2526_s3 + $0x18] sm:$0xff]   ;;  %v1625_v23 = vld [vmem:[%s2526_s3 + $0x60] sm:$0xff]   ;;  %v137_v25 = vld [vmem:[%s2525_s1 + $0x70] sm:$0xff] }
   0x9   :  { %1305 = vmatpush3.bf16.msra.mxu0 %v1620_v14  ;;  %v138_v24 = vld [vmem:[%s2525_s1 + $0x78] sm:$0xff]  ;;  %v1626_v26 = vld [vmem:[%s2526_s3 + $0x20] sm:$0xff]   ;;  %v1627_v27 = vld [vmem:[%s2526_s3 + $0x68] sm:$0xff]  }
   0xa   :  { %182 = vperm.xlu1 %1616, %v128_v5   ;;  %177 = vperm.xlu0 %1615, %v127_v6   ;;  %v140_v28 = vld [vmem:[%s2525_s1 + $0x88] sm:$0xff]  ;;  %v139_v29 = vld [vmem:[%s2525_s1 + $0x80] sm:$0xff]  ;;  %v1629_v31 = vld [vmem:[%s2526_s3 + $0x70] sm:$0xff]  }
   0xb   :  { %1306 = vmatprep.subr.bf16.mxu0 %v1621_v15  ;;  %v1628_v30 = vld [vmem:[%s2526_s3 + $0x28] sm:$0xff]   ;;  %v142_v32 = vld [vmem:[%s2525_s1 + $0x98] sm:$0xff]  ;;  %v141_v33 = vld [vmem:[%s2525_s1 + $0x90] sm:$0xff] }
   0xc   :  { %v1630_v34 = vld [vmem:[%s2526_s3 + $0x30] sm:$0xff]   ;;  %v1631_v35 = vld [vmem:[%s2526_s3 + $0x78] sm:$0xff]   ;;  %v144_v36 = vld [vmem:[%s2525_s1 + $0xa8] sm:$0xff] }
   0xd   :  { %1307 = vmatpush3.bf16.msra.mxu0 %v1622_v18  ;;  %v143_v37 = vld [vmem:[%s2525_s1 + $0xa0] sm:$0xff]  ;;  %v1632_v38 = vld [vmem:[%s2526_s3 + $0x38] sm:$0xff]   ;;  %v145_v40 = vld [vmem:[%s2525_s1 + $0xb0] sm:$0xff] }
   0xe   :  { %192 = vperm.xlu1 %1616, %v130_v7   ;;  %187 = vperm.xlu0 %1615, %v129_v8   ;;  %v146_v39 = vld [vmem:[%s2525_s1 + $0xb8] sm:$0xff]  ;;  %v148_v41 = vld [vmem:[%s2525_s1 + $0xc8] sm:$0xff]  ;;  %v147_v42 = vld [vmem:[%s2525_s1 + $0xc0] sm:$0xff] }
   0xf   :  { %1308 = vmatprep.subr.bf16.mxu0 %v1623_v19  ;;  %v150_v43 = vld [vmem:[%s2525_s1 + $0xd8] sm:$0xff]  ;;  %v149_v44 = vld [vmem:[%s2525_s1 + $0xd0] sm:$0xff]  ;;  %v152_v45 = vld [vmem:[%s2525_s1 + $0xe8] sm:$0xff] }
  0x10   :  { %v151_v46 = vld [vmem:[%s2525_s1 + $0xe0] sm:$0xff]  ;;  %v154_v47 = vld [vmem:[%s2525_s1 + $0xf8] sm:$0xff]  ;;  %v153_v48 = vld [vmem:[%s2525_s1 + $0xf0] sm:$0xff] }
  0x11   :  { %1309 = vmatpush3.bf16.msra.mxu0 %v1624_v22  ;;  %v29_v50 = vld [vmem:[%s2527_s0 + $0x10] sm:$0xff]  ;;  %v27_v52 = vld [vmem:[%s2527_s0] sm:$0xff]  ;;  %v30_v54 = vld [vmem:[%s2527_s0 + $0x18] sm:$0xff] }
  0x12   :  { %202 = vperm.xlu1 %1616, %v132_v10   ;;  %197 = vperm.xlu0 %1615, %v131_v13   ;;  %v64_v53 = vunpack.c.h.bf16 %v29_v50  ;;  %v28_v55 = vld [vmem:[%s2527_s0 + $0x8] sm:$0xff]  ;;  %v59_v60 = vunpack.c.l.bf16 %v27_v52  ;;  %v60_v61 = vunpack.c.h.bf16 %v27_v52  ;;  %v379_v62 = vld [vmem:[%s2528_s2] sm:$0x3]  ;;  %v66_v63 = vunpack.c.h.bf16 %v30_v54 }
  0x13   :  { %1310 = vmatprep.subr.bf16.mxu0 %v1625_v23  ;;  %v61_v0 = vunpack.c.l.bf16 %v28_v55  ;;  %v62_v1 = vunpack.c.h.bf16 %v28_v55  ;;  %v1841_v3 = vrot.slane %v379_v62, %v383_v56  ;;  %v1843_v4 = vrot.slane %v379_v62, %v387_v57  ;;  %v32_v12 = vld [vmem:[%s2527_s0 + $0x28] sm:$0xff]  ;;  %v31_v13 = vld [vmem:[%s2527_s0 + $0x20] sm:$0xff] }
  0x14   :  { %v63_v14 = vunpack.c.l.bf16 %v29_v50  ;;  %v70_v23 = vunpack.c.h.bf16 %v32_v12  ;;  %v1902_v52 = vld [vmem:[%s2527_s0 + $0x48] sm:$0xff] }
  0x15   :  { %1311 = vmatpush3.bf16.msra.mxu0 %v1626_v26 }
  0x16   :  { %212 = vperm.xlu1 %1616, %v134_v16   ;;  %207 = vperm.xlu0 %1615, %v133_v17   ;;  %v1633_v16 = vld [vmem:[%s2529_s4] sm:$0xff]   ;;  %v65_v17 = vunpack.c.l.bf16 %v30_v54 }
  0x17   :  { %1312 = vmatprep.subr.bf16.mxu0 %v1627_v27  ;;  %v1634_v27 = vld [vmem:[%s2529_s4 + $0x8] sm:$0xff]   ;;  %1598 = vmatprep.subr.bf16.mxu1 %v1633_v16 }
  0x18   :  { %1606 = vmatpush3.bf16.msra.mxu1 %v1633_v16 }
  0x19   :  { %1313 = vmatpush3.bf16.msra.mxu0 %v1628_v30  ;;  %1599 = vmatprep.subr.bf16.mxu1 %v1634_v27 }
  0x1a   :  { %222 = vperm.xlu1 %1616, %v136_v20   ;;  %217 = vperm.xlu0 %1615, %v135_v21  }
  0x1b   :  { %1314 = vmatprep.subr.bf16.mxu0 %v1629_v31 }
  0x1c   :  { %1607 = vmatpush3.bf16.msra.mxu1 %v1634_v27 }
  0x1d   :  { %1315 = vmatpush3.bf16.msra.mxu0 %v1630_v34 }
  0x1e   :  { %232 = vperm.xlu1 %1616, %v138_v24   ;;  %227 = vperm.xlu0 %1615, %v137_v25   ;;  %v68_v25 = vunpack.c.h.bf16 %v31_v13 }
  0x1f   :  { %1316 = vmatprep.subr.bf16.mxu0 %v1631_v35 }
  0x21   :  { %1317 = vmatpush3.bf16.msra.mxu0 %v1632_v38  ;;  %v1882_v38 = vld [vmem:[%s2527_s0 + $0x30] sm:$0xff] }
  0x22   :  { %242 = vperm.xlu1 %1616, %v140_v28   ;;  %237 = vperm.xlu0 %1615, %v139_v29   ;;  %v71_v62 = vunpack.c.l.bf16 %v1882_v38 }
  0x23   :  { %1550 = vmatprep.subr.bf16.mxu0 %v1633_v16 }
  0x26   :  { %252 = vperm.xlu1 %1616, %v142_v32   ;;  %247 = vperm.xlu0 %1615, %v141_v33  }
  0x2a   :  { %262 = vperm.xlu1 %1616, %v144_v36   ;;  %257 = vperm.xlu0 %1615, %v143_v37   ;;  %v1877_v37 = vld [vmem:[%s2527_s0 + $0x38] sm:$0xff] }
  0x2e   :  { %272 = vperm.xlu1 %1616, %v146_v39   ;;  %267 = vperm.xlu0 %1615, %v145_v40  }
  0x32   :  { %282 = vperm.xlu1 %1616, %v148_v41   ;;  %277 = vperm.xlu0 %1615, %v147_v42   ;;  %v69_v41 = vunpack.c.l.bf16 %v32_v12  ;;  %v67_v42 = vunpack.c.l.bf16 %v31_v13  ;;  %v1954_v12 = vld [vmem:[%s2527_s0 + $0x78] sm:$0xff]  ;;  %v1959_v13 = vld [vmem:[%s2527_s0 + $0x70] sm:$0xff] }
  0x36   :  { %292 = vperm.xlu1 %1616, %v150_v43   ;;  %287 = vperm.xlu0 %1615, %v149_v44   ;;  %v1635_v43 = vld [vmem:[%s2529_s4 + $0x10] sm:$0xff]  }
  0x37   :  { %1600 = vmatprep.subr.bf16.mxu1 %v1635_v43 }
  0x38   :  { %1608 = vmatpush3.bf16.msra.mxu1 %v1635_v43 }
  0x3a   :  { %302 = vperm.xlu1 %1616, %v152_v45   ;;  %297 = vperm.xlu0 %1615, %v151_v46   ;;  %v74_v46 = vunpack.c.h.bf16 %v1877_v37 }
  0x3e   :  { %312 = vperm.xlu1 %1616, %v154_v47   ;;  %307 = vperm.xlu0 %1615, %v153_v48   ;;  %v72_v47 = vunpack.c.h.bf16 %v1882_v38 }
  0x81   :  { %v168_v58 = vpop.permute.xlu1 %167  ;;  %v158_v59 = vpop.permute.xlu0 %157 }
  0x82   :  { %v320_v2 = vmul.f32 %v168_v58, %v64_v53  ;;  %v315_v5 = vmul.f32 %v158_v59, %v59_v60  ;;  %v316_v6 = vmul.f32 %v158_v59, %v60_v61  ;;  %v319_v31 = vmul.f32 %v168_v58, %v63_v14  ;;  %v1907_v53 = vld [vmem:[%s2527_s0 + $0x40] sm:$0xff]  ;;  %v1918_v58 = vld [vmem:[%s2527_s0 + $0x58] sm:$0xff] }
  0x83   :  { %v73_v61 = vunpack.c.l.bf16 %v1877_v37 }
  0x84   :  { %v396_v15 = vmul.f32 %v1843_v4, %v320_v2  ;;  %v391_v21 = vmul.f32 %v1841_v3, %v315_v5  ;;  %v392_v26 = vmul.f32 %v1843_v4, %v316_v6  ;;  %v395_v39 = vmul.f32 %v1841_v3, %v319_v31  ;;  %v1940_v6 = vld [vmem:[%s2527_s0 + $0x68] sm:$0xff] }
  0x85   :  { %v173_v7 = vpop.permute.xlu1 %172  ;;  %v163_v8 = vpop.permute.xlu0 %162  ;;  %v75_v2 = vunpack.c.l.bf16 %v1907_v53  ;;  %v76_v5 = vunpack.c.h.bf16 %v1907_v53 }
  0x86   :  { %v322_v9 = vmul.f32 %v173_v7, %v66_v63  ;;  %v317_v10 = vmul.f32 %v163_v8, %v61_v0  ;;  %v318_v11 = vmul.f32 %v163_v8, %v62_v1  ;;  %v321_v32 = vmul.f32 %v173_v7, %v65_v17  ;;  %v1929_v63 = vld [vmem:[%s2527_s0 + $0x50] sm:$0xff]  ;;  %v1945_v7 = vld [vmem:[%s2527_s0 + $0x60] sm:$0xff] }
  0x87   :  { %v77_v0 = vunpack.c.l.bf16 %v1902_v52  ;;  %v78_v1 = vunpack.c.h.bf16 %v1902_v52  ;;  %v80_v17 = vunpack.c.h.bf16 %v1929_v63 }
  0x88   :  { %v398_v18 = vmul.f32 %v1843_v4, %v322_v9  ;;  %v393_v19 = vmul.f32 %v1841_v3, %v317_v10  ;;  %v394_v20 = vmul.f32 %v1843_v4, %v318_v11  ;;  %v397_v40 = vmul.f32 %v1841_v3, %v321_v32  ;;  %v1985_v32 = vld [vmem:[%s2527_s0 + $0x80] sm:$0xff] }
  0x89   :  { %v183_v22 = vpop.permute.xlu1 %182  ;;  %v178_v24 = vpop.permute.xlu0 %177  ;;  %v81_v10 = vunpack.c.l.bf16 %v1918_v58  ;;  %v82_v11 = vunpack.c.h.bf16 %v1918_v58 }
  0x8a   :  { %v1863_v28 = vpack.c.bf16 %v394_v20, %v392_v26  ;;  %v1865_v29 = vpack.c.bf16 %v393_v19, %v391_v21  ;;  %v1867_v30 = vpack.c.bf16 %v398_v18, %v396_v15  ;;  %v326_v33 = vmul.f32 %v183_v22, %v70_v23  ;;  %v1972_v20 = vld [vmem:[%s2527_s0 + $0x88] sm:$0xff] }
  0x8b   :  { %v324_v34 = vmul.f32 %v178_v24, %v68_v25  ;;  %v325_v50 = vmul.f32 %v183_v22, %v69_v41  ;;  %v323_v51 = vmul.f32 %v178_v24, %v67_v42  ;;  %v1909_v54 = vpack.c.bf16 %v397_v40, %v395_v39  ;;  %v2003_v41 = vld [vmem:[%s2527_s0 + $0xa8] sm:$0xff]  ;;  %v2008_v42 = vld [vmem:[%s2527_s0 + $0xa0] sm:$0xff]  ;;  %v2054_v40 = vld [vmem:[%s2527_s0 + $0xd8] sm:$0xff] }
  0x8c   :  { %654 = vmatprep.mubr.bf16.mxu0 %v1863_v28  ;;  %v402_v44 = vmul.f32 %v1843_v4, %v326_v33  ;;  %v86_v22 = vunpack.c.h.bf16 %v1940_v6  ;;  %v46_v33 = vld [vmem:[%s2527_s0 + $0x98] sm:$0xff]  ;;  %v2076_v23 = vld [vmem:[%s2527_s0 + $0xe8] sm:$0xff] }
  0x8d   :  { %v1870_v35 = vpop.permute.xlu1 %192  ;;  %v1872_v36 = vpop.permute.xlu0 %187  ;;  %655 = vmatmul.mubr.bf16.vlgmr.msra.gmra.mrb[0].mxu0 %v1865_v29  ;;  %v400_v45 = vmul.f32 %v1843_v4, %v324_v34  ;;  %v401_v8 = vmul.f32 %v1841_v3, %v325_v50  ;;  %v399_v9 = vmul.f32 %v1841_v3, %v323_v51  ;;  %v1993_v34 = vld [vmem:[%s2527_s0 + $0x90] sm:$0xff]  ;;  %v97_v51 = vunpack.c.l.bf16 %v46_v33 }
  0x8e   :  { %662 = vmatprep.mubr.bf16.mxu0 %v1867_v30  ;;  %1551 = vmatpush3.bf16.msra.mxu0 %v1633_v16  ;;  %v330_v55 = vmul.f32 %v1870_v35, %v74_v46  ;;  %v328_v56 = vmul.f32 %v1872_v36, %v72_v47  ;;  %v79_v16 = vunpack.c.l.bf16 %v1929_v63  ;;  %v329_v37 = vmul.f32 %v1870_v35, %v73_v61  ;;  %v2022_v47 = vld [vmem:[%s2527_s0 + $0xb8] sm:$0xff]  ;;  %v2030_v61 = vld [vmem:[%s2527_s0 + $0xb0] sm:$0xff] }
  0x8f   :  { %1552 = vmatprep.subr.bf16.mxu0 %v1634_v27  ;;  %v1922_v60 = vpack.c.bf16 %v402_v44, %v400_v45  ;;  %v327_v38 = vmul.f32 %v1872_v36, %v71_v62  ;;  %v1997_v39 = vpack.c.bf16 %v401_v8, %v399_v9  ;;  %v96_v62 = vunpack.c.h.bf16 %v1993_v34  ;;  %v2040_v9 = vld [vmem:[%s2527_s0 + $0xc8] sm:$0xff] }
  0x90   :  { %v406_v14 = vmul.f32 %v1843_v4, %v330_v55  ;;  %v404_v15 = vmul.f32 %v1843_v4, %v328_v56  ;;  %v98_v55 = vunpack.c.h.bf16 %v46_v33  ;;  %v95_v56 = vunpack.c.l.bf16 %v1993_v34 }
  0x91   :  { %v1895_v48 = vpop.permute.xlu1 %202  ;;  %v1897_v49 = vpop.permute.xlu0 %197  ;;  %v99_v8 = vunpack.c.l.bf16 %v2008_v42  ;;  %v403_v33 = vmul.f32 %v1841_v3, %v327_v38  ;;  %v100_v34 = vunpack.c.h.bf16 %v2008_v42  ;;  %v2067_v42 = vld [vmem:[%s2527_s0 + $0xd0] sm:$0xff]  ;;  %v104_v31 = vunpack.c.h.bf16 %v2030_v61 }
  0x92   :  { %1553 = vmatpush3.bf16.msra.mxu0 %v1634_v27  ;;  %v332_v35 = vmul.f32 %v1897_v49, %v76_v5  ;;  %v2016_v45 = vpack.c.bf16 %v406_v14, %v404_v15  ;;  %v102_v5 = vunpack.c.h.bf16 %v2003_v41  ;;  %v2045_v14 = vld [vmem:[%s2527_s0 + $0xc0] sm:$0xff]  ;;  %v405_v15 = vmul.f32 %v1841_v3, %v329_v37 }
  0x93   :  { %1554 = vmatprep.subr.bf16.mxu0 %v1635_v43  ;;  %v333_v21 = vmul.f32 %v1895_v48, %v77_v0  ;;  %v331_v38 = vmul.f32 %v1897_v49, %v75_v2 }
  0x94   :  { %v408_v46 = vmul.f32 %v1843_v4, %v332_v35 }
  0x95   :  { %v1913_v57 = vpop.permute.xlu1 %212  ;;  %v1920_v59 = vpop.permute.xlu0 %207  ;;  %663 = vmatmul.mubr.bf16.gmra.mrb[4].mxu0 %v1909_v54  ;;  %v409_v26 = vmul.f32 %v1841_v3, %v333_v21 }
  0x96   :  { %670 = vmatprep.mubr.bf16.mxu0 %v1922_v60  ;;  %1555 = vmatpush3.bf16.msra.mxu0 %v1635_v43  ;;  %v334_v43 = vmul.f32 %v1895_v48, %v78_v1  ;;  %v101_v1 = vunpack.c.l.bf16 %v2003_v41  ;;  %v2094_v48 = vld [vmem:[%s2527_s0 + $0xe0] sm:$0xff]  ;;  %v338_v49 = vmul.f32 %v1913_v57, %v82_v11  ;;  %v336_v52 = vmul.f32 %v1920_v59, %v80_v17 }
  0x97   :  { %v407_v11 = vmul.f32 %v1841_v3, %v331_v38  ;;  %v337_v21 = vmul.f32 %v1913_v57, %v81_v10  ;;  %v335_v57 = vmul.f32 %v1920_v59, %v79_v16  ;;  %v2533_v59 = vunpack.c.h.bf16 %v1945_v7 }
  0x98   :  { %v410_v50 = vmul.f32 %v1843_v4, %v334_v43  ;;  %v2086_v43 = vpack.c.bf16 %v405_v15, %v403_v33  ;;  %v117_v15 = vunpack.c.l.bf16 %v2076_v23 }
  0x99   :  { %v1965_v18 = vpop.permute.xlu1 %222  ;;  %v1967_v19 = vpop.permute.xlu0 %217  ;;  %v2129_v58 = vpack.c.bf16 %v409_v26, %v407_v11  ;;  %v2534_v11 = vunpack.c.l.bf16 %v2022_v47 }
  0x9a   :  { %v2102_v2 = vpack.c.bf16 %v410_v50, %v408_v46  ;;  %v342_v63 = vmul.f32 %v1965_v18, %v86_v22  ;;  %v340_v16 = vmul.f32 %v1967_v19, %v2533_v59 }
  0x9c   :  { %v416_v59 = vmul.f32 %v1843_v4, %v340_v16  ;;  %v2542_v16 = vunpack.c.l.bf16 %v1945_v7 }
  0x9d   :  { %v2012_v44 = vpop.permute.xlu1 %232  ;;  %v2014_v36 = vpop.permute.xlu0 %227  ;;  %671 = vmatmul.mubr.bf16.gmra.mrb[8].mxu0 %v1997_v39 }
  0x9e   :  { %678 = vmatprep.mubr.bf16.mxu0 %v2016_v45 }
  0xa1   :  { %v2058_v27 = vpop.permute.xlu1 %242  ;;  %v2060_v25 = vpop.permute.xlu0 %237 }
  0xa5   :  { %v253_v53 = vpop.permute.xlu1 %252  ;;  %v248_v0 = vpop.permute.xlu0 %247  ;;  %679 = vmatmul.mubr.bf16.gmra.mrb[12].mxu0 %v2086_v43 }
  0xa6   :  { %v353_v33 = vmul.f32 %v253_v53, %v97_v51  ;;  %v354_v24 = vmul.f32 %v253_v53, %v98_v55  ;;  %v351_v41 = vmul.f32 %v248_v0, %v95_v56  ;;  %v352_v35 = vmul.f32 %v248_v0, %v96_v62  ;;  %686 = vmatprep.mubr.bf16.mxu0 %v2102_v2 }
  0xa7   :  { %v414_v56 = vmul.f32 %v1843_v4, %v338_v49  ;;  %v412_v62 = vmul.f32 %v1843_v4, %v336_v52  ;;  %v116_v0 = vunpack.c.h.bf16 %v2094_v48 }
  0xa8   :  { %v429_v46 = vmul.f32 %v1841_v3, %v353_v33  ;;  %v430_v50 = vmul.f32 %v1843_v4, %v354_v24  ;;  %v427_v51 = vmul.f32 %v1841_v3, %v351_v41  ;;  %v428_v55 = vmul.f32 %v1843_v4, %v352_v35  ;;  %v2124_v41 = vld [vmem:[%s2527_s0 + $0xf8] sm:$0xff] }
  0xa9   :  { %v263_v38 = vpop.permute.xlu1 %262  ;;  %v258_v53 = vpop.permute.xlu0 %257  ;;  %v2145_v52 = vpack.c.bf16 %v414_v56, %v412_v62 }
  0xaa   :  { %v357_v37 = vmul.f32 %v263_v38, %v101_v1  ;;  %v358_v33 = vmul.f32 %v263_v38, %v102_v5  ;;  %v355_v17 = vmul.f32 %v258_v53, %v99_v8  ;;  %v356_v24 = vmul.f32 %v258_v53, %v100_v34 }
  0xab   :  { %v2131_v10 = vpack.c.bf16 %v430_v50, %v428_v55  ;;  %v2133_v35 = vpack.c.bf16 %v429_v46, %v427_v51  ;;  %v2536_v51 = vunpack.c.l.bf16 %v2030_v61  ;;  %v413_v38 = vmul.f32 %v1841_v3, %v337_v21 }
  0xac   :  { %v433_v1 = vmul.f32 %v1841_v3, %v357_v37  ;;  %v434_v5 = vmul.f32 %v1843_v4, %v358_v33  ;;  %v431_v8 = vmul.f32 %v1841_v3, %v355_v17  ;;  %v432_v34 = vmul.f32 %v1843_v4, %v356_v24 }
  0xad   :  { %v273_v26 = vpop.permute.xlu1 %272  ;;  %v268_v49 = vpop.permute.xlu0 %267  ;;  %v121_v37 = vunpack.c.l.bf16 %v2124_v41  ;;  %v2535_v17 = vunpack.c.h.bf16 %v2022_v47  ;;  %687 = vmatmul.mubr.bf16.gmra.mrb[16].mxu0 %v2129_v58  ;;  %v411_v53 = vmul.f32 %v1841_v3, %v335_v57  ;;  %v2537_v24 = vunpack.c.l.bf16 %v1940_v6 }
  0xae   :  { %v361_v46 = vmul.f32 %v273_v26, %v2534_v11  ;;  %v359_v55 = vmul.f32 %v268_v49, %v2536_v51  ;;  %v360_v22 = vmul.f32 %v268_v49, %v104_v31  ;;  %694 = vmatprep.mubr.bf16.mxu0 %v2145_v52  ;;  %v2158_v56 = vpack.c.bf16 %v434_v5, %v432_v34 }
  0xaf   :  { %v362_v50 = vmul.f32 %v273_v26, %v2535_v17  ;;  %v2160_v62 = vpack.c.bf16 %v433_v1, %v431_v8  ;;  %v341_v21 = vmul.f32 %v1965_v18, %v2537_v24  ;;  %v418_v57 = vmul.f32 %v1843_v4, %v342_v63  ;;  %v57_v63 = vld [vmem:[%s2527_s0 + $0xf0] sm:$0xff] }
  0xb0   :  { %v437_v33 = vmul.f32 %v1841_v3, %v361_v46  ;;  %v435_v61 = vmul.f32 %v1841_v3, %v359_v55  ;;  %v436_v31 = vmul.f32 %v1843_v4, %v360_v22  ;;  %v122_v1 = vunpack.c.h.bf16 %v2124_v41 }
  0xb1   :  { %v438_v47 = vmul.f32 %v1843_v4, %v362_v50  ;;  %v283_v5 = vpop.permute.xlu1 %282  ;;  %v278_v34 = vpop.permute.xlu0 %277  ;;  %v2538_v8 = vunpack.c.l.bf16 %v2040_v9  ;;  %v2539_v49 = vunpack.c.h.bf16 %v2040_v9  ;;  %v2540_v46 = vunpack.c.l.bf16 %v2045_v14 }
  0xb2   :  { %v2541_v6 = vunpack.c.h.bf16 %v2045_v14  ;;  %v339_v50 = vmul.f32 %v1967_v19, %v2542_v16  ;;  %v2186_v51 = vpack.c.bf16 %v413_v38, %v411_v53  ;;  %v2190_v9 = vpack.c.bf16 %v437_v33, %v435_v61 }
  0xb3   :  { %v365_v26 = vmul.f32 %v283_v5, %v2538_v8  ;;  %v366_v11 = vmul.f32 %v283_v5, %v2539_v49  ;;  %v363_v17 = vmul.f32 %v278_v34, %v2540_v46  ;;  %v2188_v55 = vpack.c.bf16 %v438_v47, %v436_v31 }
  0xb4   :  { %v364_v18 = vmul.f32 %v278_v34, %v2541_v6  ;;  %v2543_v34 = vunpack.c.h.bf16 %v1954_v12  ;;  %v2544_v19 = vunpack.c.h.bf16 %v1959_v13  ;;  %v2202_v33 = vpack.c.bf16 %v418_v57, %v416_v59 }
  0xb5   :  { %v441_v22 = vmul.f32 %v1841_v3, %v365_v26  ;;  %v442_v24 = vmul.f32 %v1843_v4, %v366_v11  ;;  %v439_v14 = vmul.f32 %v1841_v3, %v363_v17  ;;  %v293_v53 = vpop.permute.xlu1 %292  ;;  %v288_v47 = vpop.permute.xlu0 %287  ;;  %v119_v61 = vunpack.c.l.bf16 %v57_v63  ;;  %695 = vmatmul.mubr.bf16.gmra.mrb[20].mxu0 %v2186_v51 }
  0xb6   :  { %v440_v5 = vmul.f32 %v1843_v4, %v364_v18  ;;  %v346_v7 = vmul.f32 %v2012_v44, %v2543_v34  ;;  %v344_v38 = vmul.f32 %v2014_v36, %v2544_v19  ;;  %v2545_v31 = vunpack.c.l.bf16 %v2054_v40  ;;  %702 = vmatprep.mubr.bf16.mxu0 %v2202_v33 }
  0xb7   :  { %v2546_v26 = vunpack.c.h.bf16 %v2054_v40  ;;  %v2547_v11 = vunpack.c.l.bf16 %v2067_v42  ;;  %v2548_v17 = vunpack.c.h.bf16 %v2067_v42  ;;  %v417_v18 = vmul.f32 %v1841_v3, %v341_v21 }
  0xb8   :  { %v369_v8 = vmul.f32 %v293_v53, %v2545_v31  ;;  %v415_v57 = vmul.f32 %v1841_v3, %v339_v50  ;;  %v2216_v59 = vpack.c.bf16 %v442_v24, %v440_v5  ;;  %v2218_v16 = vpack.c.bf16 %v441_v22, %v439_v14 }
  0xb9   :  { %v370_v49 = vmul.f32 %v293_v53, %v2546_v26  ;;  %v367_v46 = vmul.f32 %v288_v47, %v2547_v11  ;;  %v368_v6 = vmul.f32 %v288_v47, %v2548_v17  ;;  %v2549_v53 = vunpack.c.l.bf16 %v1954_v12  ;;  %v303_v24 = vpop.permute.xlu1 %302  ;;  %v298_v5 = vpop.permute.xlu0 %297 }
  0xba   :  { %v445_v40 = vmul.f32 %v1841_v3, %v369_v8  ;;  %v422_v50 = vmul.f32 %v1843_v4, %v346_v7  ;;  %v420_v47 = vmul.f32 %v1843_v4, %v344_v38  ;;  %v120_v22 = vunpack.c.h.bf16 %v57_v63 }
  0xbb   :  { %v446_v34 = vmul.f32 %v1843_v4, %v370_v49  ;;  %v443_v19 = vmul.f32 %v1841_v3, %v367_v46  ;;  %v444_v42 = vmul.f32 %v1843_v4, %v368_v6  ;;  %v345_v21 = vmul.f32 %v2012_v44, %v2549_v53 }
  0xbc   :  { %v373_v14 = vmul.f32 %v303_v24, %v117_v15  ;;  %v2550_v31 = vunpack.c.h.bf16 %v2076_v23  ;;  %v2551_v26 = vunpack.c.l.bf16 %v2094_v48  ;;  %v372_v12 = vmul.f32 %v298_v5, %v116_v0 }
  0xbd   :  { %v2552_v44 = vunpack.c.l.bf16 %v1959_v13  ;;  %v2240_v38 = vpack.c.bf16 %v417_v18, %v415_v57  ;;  %v2242_v11 = vpack.c.bf16 %v446_v34, %v444_v42  ;;  %v2244_v63 = vpack.c.bf16 %v445_v40, %v443_v19  ;;  %v313_v18 = vpop.permute.xlu1 %312  ;;  %v308_v57 = vpop.permute.xlu0 %307 }
  0xbe   :  { %v374_v8 = vmul.f32 %v303_v24, %v2550_v31  ;;  %v371_v49 = vmul.f32 %v298_v5, %v2551_v26  ;;  %v449_v15 = vmul.f32 %v1841_v3, %v373_v14  ;;  %v448_v17 = vmul.f32 %v1843_v4, %v372_v12 }
  0xbf   :  { %v343_v7 = vmul.f32 %v2014_v36, %v2552_v44  ;;  %v2553_v48 = vunpack.c.h.bf16 %v1972_v20  ;;  %v91_v36 = vunpack.c.l.bf16 %v1985_v32  ;;  %v2554_v0 = vunpack.c.h.bf16 %v1985_v32  ;;  %703 = vmatmul.mubr.bf16.gmra.mrb[24].mxu0 %v2240_v38 }
  0xc0   :  { %v450_v23 = vmul.f32 %v1843_v4, %v374_v8  ;;  %v447_v46 = vmul.f32 %v1841_v3, %v371_v49  ;;  %v2257_v40 = vpack.c.bf16 %v422_v50, %v420_v47  ;;  %v377_v34 = vmul.f32 %v313_v18, %v121_v37 }
  0xc1   :  { %v350_v13 = vmul.f32 %v2058_v27, %v2553_v48  ;;  %v348_v6 = vmul.f32 %v2060_v25, %v2554_v0  ;;  %v378_v19 = vmul.f32 %v313_v18, %v122_v1  ;;  %v375_v42 = vmul.f32 %v308_v57, %v119_v61 }
  0xc2   :  { %v376_v53 = vmul.f32 %v308_v57, %v120_v22  ;;  %v421_v24 = vmul.f32 %v1841_v3, %v345_v21  ;;  %v419_v5 = vmul.f32 %v1841_v3, %v343_v7  ;;  %710 = vmatprep.mubr.bf16.mxu0 %v2257_v40  ;;  %v2265_v32 = vpack.c.bf16 %v450_v23, %v448_v17 }
  0xc3   :  { %v2267_v14 = vpack.c.bf16 %v449_v15, %v447_v46  ;;  %v453_v50 = vmul.f32 %v1841_v3, %v377_v34  ;;  %v454_v41 = vmul.f32 %v1843_v4, %v378_v19  ;;  %v451_v37 = vmul.f32 %v1841_v3, %v375_v42  ;;  %v1640_v15 = vld [vmem:[%s2529_s4 + $0x38] sm:$0xff]   ;;  %v2326_v46 = vld [vmem:[%s2530_s5] ss:$0 sm:$0xff] }
  0xc4   :  { %v452_v1 = vmul.f32 %v1843_v4, %v376_v53  ;;  %v426_v61 = vmul.f32 %v1843_v4, %v350_v13  ;;  %v424_v21 = vmul.f32 %v1843_v4, %v348_v6  ;;  %v2555_v31 = vunpack.c.l.bf16 %v1972_v20  ;;  %v1636_v20 = vld [vmem:[%s2529_s4 + $0x18] sm:$0xff]  }
  0xc5   :  { %v2277_v22 = vpack.c.bf16 %v453_v50, %v451_v37  ;;  %v347_v26 = vmul.f32 %v2060_v25, %v91_v36  ;;  %v2283_v49 = vpack.c.bf16 %v421_v24, %v419_v5  ;;  %1556 = vmatprep.subr.bf16.mxu0 %v1636_v20  ;;  %1601 = vmatprep.subr.bf16.mxu1 %v1636_v20  ;;  %v1638_v25 = vld [vmem:[%s2529_s4 + $0x28] sm:$0xff]  }
  0xc6   :  { %v2275_v47 = vpack.c.bf16 %v454_v41, %v452_v1  ;;  %v349_v8 = vmul.f32 %v2058_v27, %v2555_v31  ;;  %v2285_v12 = vpack.c.bf16 %v426_v61, %v424_v21  ;;  %1557 = vmatpush3.bf16.msra.mxu0 %v1636_v20  ;;  %1609 = vmatpush3.bf16.msra.mxu1 %v1636_v20  ;;  %v1639_v27 = vld [vmem:[%s2529_s4 + $0x30] sm:$0xff]  }
  0xc7   :  { %711 = vmatmul.mubr.bf16.gmra.mrb[28].mxu0 %v2283_v49  ;;  %v423_v44 = vmul.f32 %v1841_v3, %v347_v26 }
  0xc8   :  { %718 = vmatprep.mubr.bf16.mxu0 %v2285_v12  ;;  %v425_v4 = vmul.f32 %v1841_v3, %v349_v8  ;;  %v1637_v3 = vld [vmem:[%s2529_s4 + $0x20] sm:$0xff]  }
  0xc9   :  { %1558 = vmatprep.subr.bf16.mxu0 %v1637_v3  ;;  %1602 = vmatprep.subr.bf16.mxu1 %v1637_v3 }
  0xca   :  { %v2291_v7 = vpack.c.bf16 %v425_v4, %v423_v44  ;;  %1610 = vmatpush3.bf16.msra.mxu1 %v1637_v3  ;;  %1559 = vmatpush3.bf16.msra.mxu0 %v1637_v3 }
  0xcb   :  { %1560 = vmatprep.subr.bf16.mxu0 %v1638_v25  ;;  %1603 = vmatprep.subr.bf16.mxu1 %v1638_v25 }
  0xce   :  { %1611 = vmatpush3.bf16.msra.mxu1 %v1638_v25  ;;  %1561 = vmatpush3.bf16.msra.mxu0 %v1638_v25 }
  0xcf   :  { %719 = vmatmul.mubr.bf16.gmra.mrb[32].mxu0 %v2291_v7  ;;  %1562 = vmatprep.subr.bf16.mxu0 %v1639_v27 }
  0xd0   :  { %726 = vmatprep.mubr.bf16.mxu0 %v2131_v10  ;;  %1604 = vmatprep.subr.bf16.mxu1 %v1639_v27 }
  0xd2   :  { %1612 = vmatpush3.bf16.msra.mxu1 %v1639_v27  ;;  %1563 = vmatpush3.bf16.msra.mxu0 %v1639_v27 }
  0xd3   :  { %1564 = vmatprep.subr.bf16.mxu0 %v1640_v15  ;;  %1605 = vmatprep.subr.bf16.mxu1 %v1640_v15 }
  0xd6   :  { %1613 = vmatpush3.bf16.msra.mxu1 %v1640_v15  ;;  %1565 = vmatpush3.bf16.msra.mxu0 %v1640_v15 }
  0xd7   :  { %727 = vmatmul.mubr.bf16.gmra.mrb[36].mxu0 %v2133_v35 }
  0xd8   :  { %734 = vmatprep.mubr.bf16.mxu0 %v2158_v56 }
  0xdf   :  { %735 = vmatmul.mubr.bf16.gmra.mrb[40].mxu0 %v2160_v62 }
  0xe0   :  { %742 = vmatprep.mubr.bf16.mxu0 %v2188_v55 }
  0xe7   :  { %743 = vmatmul.mubr.bf16.gmra.mrb[44].mxu0 %v2190_v9 }
  0xe8   :  { %750 = vmatprep.mubr.bf16.mxu0 %v2216_v59 }
  0xef   :  { %751 = vmatmul.mubr.bf16.gmra.mrb[48].mxu0 %v2218_v16 }
  0xf0   :  { %758 = vmatprep.mubr.bf16.mxu0 %v2242_v11 }
  0xf7   :  { %759 = vmatmul.mubr.bf16.gmra.mrb[52].mxu0 %v2244_v63 }
  0xf8   :  { %766 = vmatprep.mubr.bf16.mxu0 %v2265_v32 }
  0xff   :  { %767 = vmatmul.mubr.bf16.gmra.mrb[56].mxu0 %v2267_v14 }
 0x100   :  { %774 = vmatprep.mubr.bf16.mxu0 %v2275_v47 }
 0x107   :  { %775 = vmatmul.mubr.bf16.gmra.mrb[60].mxu0 %v2277_v22 }
 0x160   :  { %v1318_v23 = vpop.f32.mrb[0].mxu0 }
 0x161   :  { %v1319_v17 = vpop.f32.mrb[1].mxu0 }
 0x162   :  { %v1320_v48 = vadd.f32 %v1319_v17, %v1318_v23  ;;  %v1321_v13 = vpop.f32.mrb[2].mxu0 }
 0x163   :  { %v1322_v36 = vpop.f32.mrb[3].mxu0 }
 0x164   :  { %v657_v0 = vadd.f32 %v1320_v48, %v2326_v46  ;;  %v1323_v6 = vadd.f32 %v1322_v36, %v1321_v13 }
 0x166   :  { %v660_v18 = vadd.f32 %v1323_v6, %v2326_v46  ;;  %v783_v57 = vmax.f32 %v657_v0, 0.0 }
 0x168   :  { %v784_v34 = vmax.f32 %v660_v18, 0.0  ;;  %v1324_v19 = vpop.f32.mrb[4].mxu0 }
 0x169   :  { %v1325_v42 = vpop.f32.mrb[5].mxu0 }
 0x16a   :  { %v1326_v53 = vadd.f32 %v1325_v42, %v1324_v19  ;;  %v1327_v24 = vpop.f32.mrb[6].mxu0  ;;  %v815_v5 = vpack.c.bf16 %v784_v34, %v783_v57 }
 0x16b   :  { %v1328_v50 = vpop.f32.mrb[7].mxu0 }
 0x16c   :  { %v665_v41 = vadd.f32 %v1326_v53, %v2326_v46  ;;  %v1329_v37 = vadd.f32 %v1328_v50, %v1327_v24  ;;  %1566 = vmatprep.mubr.bf16.mxu0 %v815_v5 }
 0x16e   :  { %v668_v1 = vadd.f32 %v1329_v37, %v2326_v46  ;;  %v785_v61 = vmax.f32 %v665_v41, 0.0 }
 0x170   :  { %v786_v21 = vmax.f32 %v668_v1, 0.0  ;;  %v1330_v31 = vpop.f32.mrb[8].mxu0 }
 0x171   :  { %v1331_v8 = vpop.f32.mrb[9].mxu0 }
 0x172   :  { %v816_v26 = vpack.c.bf16 %v786_v21, %v785_v61  ;;  %v1332_v4 = vadd.f32 %v1331_v8, %v1330_v31  ;;  %v1333_v44 = vpop.f32.mrb[10].mxu0 }
 0x173   :  { %v1334_v20 = vpop.f32.mrb[11].mxu0 }
 0x174   :  { %v673_v3 = vadd.f32 %v1332_v4, %v2326_v46  ;;  %v1335_v25 = vadd.f32 %v1334_v20, %v1333_v44  ;;  %1567 = vmatmul.mubr.bf16.vlgmr.msra.gmra.mrb[64].mxu0 %v816_v26 }
 0x176   :  { %v676_v27 = vadd.f32 %v1335_v25, %v2326_v46  ;;  %v787_v15 = vmax.f32 %v673_v3, 0.0 }
 0x178   :  { %v788_v23 = vmax.f32 %v676_v27, 0.0  ;;  %v1336_v17 = vpop.f32.mrb[12].mxu0 }
 0x179   :  { %v1337_v48 = vpop.f32.mrb[13].mxu0 }
 0x17a   :  { %v1338_v13 = vadd.f32 %v1337_v48, %v1336_v17  ;;  %v1339_v36 = vpop.f32.mrb[14].mxu0  ;;  %v817_v0 = vpack.c.bf16 %v788_v23, %v787_v15 }
 0x17b   :  { %v1340_v6 = vpop.f32.mrb[15].mxu0 }
 0x17c   :  { %v681_v18 = vadd.f32 %v1338_v13, %v2326_v46  ;;  %v1341_v57 = vadd.f32 %v1340_v6, %v1339_v36  ;;  %1570 = vmatprep.mubr.bf16.mxu0 %v817_v0 }
 0x17e   :  { %v684_v34 = vadd.f32 %v1341_v57, %v2326_v46  ;;  %v789_v19 = vmax.f32 %v681_v18, 0.0 }
 0x180   :  { %v790_v42 = vmax.f32 %v684_v34, 0.0  ;;  %v1342_v53 = vpop.f32.mrb[16].mxu0 }
 0x181   :  { %v1343_v24 = vpop.f32.mrb[17].mxu0 }
 0x182   :  { %v1344_v5 = vadd.f32 %v1343_v24, %v1342_v53  ;;  %v1345_v50 = vpop.f32.mrb[18].mxu0  ;;  %v818_v41 = vpack.c.bf16 %v790_v42, %v789_v19 }
 0x183   :  { %v1346_v37 = vpop.f32.mrb[19].mxu0 }
 0x184   :  { %v689_v1 = vadd.f32 %v1344_v5, %v2326_v46  ;;  %v1347_v61 = vadd.f32 %v1346_v37, %v1345_v50  ;;  %1571 = vmatmul.mubr.bf16.gmra.mrb[68].mxu0 %v818_v41 }
 0x186   :  { %v692_v21 = vadd.f32 %v1347_v61, %v2326_v46  ;;  %v791_v31 = vmax.f32 %v689_v1, 0.0 }
 0x188   :  { %v792_v8 = vmax.f32 %v692_v21, 0.0  ;;  %v1348_v26 = vpop.f32.mrb[20].mxu0 }
 0x189   :  { %v1349_v4 = vpop.f32.mrb[21].mxu0 }
 0x18a   :  { %v1350_v44 = vadd.f32 %v1349_v4, %v1348_v26  ;;  %v1351_v20 = vpop.f32.mrb[22].mxu0  ;;  %v819_v3 = vpack.c.bf16 %v792_v8, %v791_v31 }
 0x18b   :  { %v1352_v25 = vpop.f32.mrb[23].mxu0 }
 0x18c   :  { %v697_v27 = vadd.f32 %v1350_v44, %v2326_v46  ;;  %v1353_v15 = vadd.f32 %v1352_v25, %v1351_v20  ;;  %1574 = vmatprep.mubr.bf16.mxu0 %v819_v3 }
 0x18e   :  { %v700_v23 = vadd.f32 %v1353_v15, %v2326_v46  ;;  %v793_v17 = vmax.f32 %v697_v27, 0.0 }
 0x190   :  { %v794_v48 = vmax.f32 %v700_v23, 0.0 }
 0x192   :  { %v1354_v13 = vpop.f32.mrb[24].mxu0  ;;  %v820_v18 = vpack.c.bf16 %v794_v48, %v793_v17 }
 0x193   :  { %v1355_v36 = vpop.f32.mrb[25].mxu0 }
 0x194   :  { %v1356_v0 = vadd.f32 %v1355_v36, %v1354_v13  ;;  %v1357_v6 = vpop.f32.mrb[26].mxu0  ;;  %1575 = vmatmul.mubr.bf16.gmra.mrb[72].mxu0 %v820_v18 }
 0x195   :  { %v1358_v57 = vpop.f32.mrb[27].mxu0 }
 0x196   :  { %v705_v34 = vadd.f32 %v1356_v0, %v2326_v46  ;;  %v1359_v19 = vadd.f32 %v1358_v57, %v1357_v6 }
 0x198   :  { %v708_v42 = vadd.f32 %v1359_v19, %v2326_v46  ;;  %v795_v53 = vmax.f32 %v705_v34, 0.0 }
 0x19a   :  { %v796_v24 = vmax.f32 %v708_v42, 0.0  ;;  %v1360_v5 = vpop.f32.mrb[28].mxu0 }
 0x19b   :  { %v1361_v50 = vpop.f32.mrb[29].mxu0 }
 0x19c   :  { %v1362_v41 = vadd.f32 %v1361_v50, %v1360_v5  ;;  %v1363_v37 = vpop.f32.mrb[30].mxu0  ;;  %v821_v1 = vpack.c.bf16 %v796_v24, %v795_v53 }
 0x19d   :  { %v1364_v61 = vpop.f32.mrb[31].mxu0 }
 0x19e   :  { %v713_v21 = vadd.f32 %v1362_v41, %v2326_v46  ;;  %v1365_v31 = vadd.f32 %v1364_v61, %v1363_v37  ;;  %1578 = vmatprep.mubr.bf16.mxu0 %v821_v1 }
 0x1a0   :  { %v716_v8 = vadd.f32 %v1365_v31, %v2326_v46  ;;  %v797_v26 = vmax.f32 %v713_v21, 0.0 }
 0x1a2   :  { %v798_v4 = vmax.f32 %v716_v8, 0.0  ;;  %v1366_v44 = vpop.f32.mrb[32].mxu0 }
 0x1a3   :  { %v1367_v20 = vpop.f32.mrb[33].mxu0 }
 0x1a4   :  { %v1368_v3 = vadd.f32 %v1367_v20, %v1366_v44  ;;  %v1369_v25 = vpop.f32.mrb[34].mxu0  ;;  %v822_v27 = vpack.c.bf16 %v798_v4, %v797_v26 }
 0x1a5   :  { %v1370_v15 = vpop.f32.mrb[35].mxu0 }
 0x1a6   :  { %v1371_v23 = vadd.f32 %v1370_v15, %v1369_v25  ;;  %1579 = vmatmul.mubr.bf16.gmra.mrb[76].mxu0 %v822_v27  ;;  %v721_v17 = vadd.f32 %v1368_v3, %v2326_v46 }
 0x1a8   :  { %v724_v48 = vadd.f32 %v1371_v23, %v2326_v46  ;;  %v799_v36 = vmax.f32 %v721_v17, 0.0 }
 0x1aa   :  { %v1372_v13 = vpop.f32.mrb[36].mxu0  ;;  %v800_v0 = vmax.f32 %v724_v48, 0.0 }
 0x1ab   :  { %v1373_v6 = vpop.f32.mrb[37].mxu0 }
 0x1ac   :  { %v1374_v18 = vadd.f32 %v1373_v6, %v1372_v13  ;;  %v1375_v57 = vpop.f32.mrb[38].mxu0  ;;  %v823_v34 = vpack.c.bf16 %v800_v0, %v799_v36 }
 0x1ad   :  { %v1376_v19 = vpop.f32.mrb[39].mxu0 }
 0x1ae   :  { %v729_v42 = vadd.f32 %v1374_v18, %v2326_v46  ;;  %v1377_v53 = vadd.f32 %v1376_v19, %v1375_v57  ;;  %1582 = vmatprep.mubr.bf16.mxu1 %v823_v34 }
 0x1b0   :  { %v732_v24 = vadd.f32 %v1377_v53, %v2326_v46  ;;  %v801_v5 = vmax.f32 %v729_v42, 0.0 }
 0x1b2   :  { %v802_v50 = vmax.f32 %v732_v24, 0.0  ;;  %v1378_v41 = vpop.f32.mrb[40].mxu0 }
 0x1b3   :  { %v1379_v37 = vpop.f32.mrb[41].mxu0 }
 0x1b4   :  { %v1380_v1 = vadd.f32 %v1379_v37, %v1378_v41  ;;  %v1381_v61 = vpop.f32.mrb[42].mxu0  ;;  %v824_v21 = vpack.c.bf16 %v802_v50, %v801_v5 }
 0x1b5   :  { %v1382_v31 = vpop.f32.mrb[43].mxu0 }
 0x1b6   :  { %v737_v8 = vadd.f32 %v1380_v1, %v2326_v46  ;;  %v1383_v26 = vadd.f32 %v1382_v31, %v1381_v61  ;;  %1583 = vmatmul.mubr.bf16.vlgmr.msra.gmra.mrb[0].mxu1 %v824_v21 }
 0x1b8   :  { %v740_v4 = vadd.f32 %v1383_v26, %v2326_v46  ;;  %v803_v44 = vmax.f32 %v737_v8, 0.0 }
 0x1ba   :  { %v804_v20 = vmax.f32 %v740_v4, 0.0  ;;  %v1384_v3 = vpop.f32.mrb[44].mxu0 }
 0x1bb   :  { %v1385_v25 = vpop.f32.mrb[45].mxu0 }
 0x1bc   :  { %v1386_v27 = vadd.f32 %v1385_v25, %v1384_v3  ;;  %v1387_v15 = vpop.f32.mrb[46].mxu0  ;;  %v825_v23 = vpack.c.bf16 %v804_v20, %v803_v44 }
 0x1bd   :  { %v1388_v17 = vpop.f32.mrb[47].mxu0 }
 0x1be   :  { %v745_v48 = vadd.f32 %v1386_v27, %v2326_v46  ;;  %v1389_v13 = vadd.f32 %v1388_v17, %v1387_v15  ;;  %1586 = vmatprep.mubr.bf16.mxu1 %v825_v23 }
 0x1c0   :  { %v748_v36 = vadd.f32 %v1389_v13, %v2326_v46  ;;  %v805_v0 = vmax.f32 %v745_v48, 0.0 }
 0x1c2   :  { %v806_v6 = vmax.f32 %v748_v36, 0.0  ;;  %v1390_v18 = vpop.f32.mrb[48].mxu0 }
 0x1c3   :  { %v1391_v57 = vpop.f32.mrb[49].mxu0 }
 0x1c4   :  { %v1392_v34 = vadd.f32 %v1391_v57, %v1390_v18  ;;  %v1393_v19 = vpop.f32.mrb[50].mxu0  ;;  %v826_v42 = vpack.c.bf16 %v806_v6, %v805_v0 }
 0x1c5   :  { %v1394_v53 = vpop.f32.mrb[51].mxu0 }
 0x1c6   :  { %v753_v24 = vadd.f32 %v1392_v34, %v2326_v46  ;;  %v1395_v5 = vadd.f32 %v1394_v53, %v1393_v19  ;;  %1587 = vmatmul.mubr.bf16.gmra.mrb[4].mxu1 %v826_v42 }
 0x1c8   :  { %v756_v50 = vadd.f32 %v1395_v5, %v2326_v46  ;;  %v807_v41 = vmax.f32 %v753_v24, 0.0 }
 0x1ca   :  { %v808_v37 = vmax.f32 %v756_v50, 0.0  ;;  %v1396_v1 = vpop.f32.mrb[52].mxu0 }
 0x1cb   :  { %v1397_v61 = vpop.f32.mrb[53].mxu0 }
 0x1cc   :  { %v1398_v21 = vadd.f32 %v1397_v61, %v1396_v1  ;;  %v1399_v31 = vpop.f32.mrb[54].mxu0  ;;  %v827_v8 = vpack.c.bf16 %v808_v37, %v807_v41 }
 0x1cd   :  { %v1400_v26 = vpop.f32.mrb[55].mxu0 }
 0x1ce   :  { %v761_v4 = vadd.f32 %v1398_v21, %v2326_v46  ;;  %v1401_v44 = vadd.f32 %v1400_v26, %v1399_v31  ;;  %1590 = vmatprep.mubr.bf16.mxu1 %v827_v8 }
 0x1d0   :  { %v764_v20 = vadd.f32 %v1401_v44, %v2326_v46  ;;  %v809_v3 = vmax.f32 %v761_v4, 0.0 }
 0x1d2   :  { %v810_v25 = vmax.f32 %v764_v20, 0.0  ;;  %v1402_v27 = vpop.f32.mrb[56].mxu0 }
 0x1d3   :  { %v1403_v15 = vpop.f32.mrb[57].mxu0 }
 0x1d4   :  { %v1404_v23 = vadd.f32 %v1403_v15, %v1402_v27  ;;  %v1405_v17 = vpop.f32.mrb[58].mxu0  ;;  %v828_v48 = vpack.c.bf16 %v810_v25, %v809_v3 }
 0x1d5   :  { %v1406_v13 = vpop.f32.mrb[59].mxu0 }
 0x1d6   :  { %v769_v36 = vadd.f32 %v1404_v23, %v2326_v46  ;;  %v1407_v0 = vadd.f32 %v1406_v13, %v1405_v17  ;;  %1591 = vmatmul.mubr.bf16.gmra.mrb[8].mxu1 %v828_v48 }
 0x1d8   :  { %v772_v6 = vadd.f32 %v1407_v0, %v2326_v46  ;;  %v811_v18 = vmax.f32 %v769_v36, 0.0 }
 0x1da   :  { %v812_v57 = vmax.f32 %v772_v6, 0.0  ;;  %v1408_v34 = vpop.f32.mrb[60].mxu0 }
 0x1db   :  { %v1409_v19 = vpop.f32.mrb[61].mxu0 }
 0x1dc   :  { %v1410_v42 = vadd.f32 %v1409_v19, %v1408_v34  ;;  %v1411_v53 = vpop.f32.mrb[62].mxu0  ;;  %v829_v24 = vpack.c.bf16 %v812_v57, %v811_v18 }
 0x1dd   :  { %v1412_v5 = vpop.f32.mrb[63].mxu0 }
 0x1de   :  { %v777_v50 = vadd.f32 %v1410_v42, %v2326_v46  ;;  %v1413_v41 = vadd.f32 %v1412_v5, %v1411_v53  ;;  %1594 = vmatprep.mubr.bf16.mxu1 %v829_v24 }
 0x1e0   :  { %v780_v37 = vadd.f32 %v1413_v41, %v2326_v46  ;;  %v813_v1 = vmax.f32 %v777_v50, 0.0 }
 0x1e2   :  { %v814_v61 = vmax.f32 %v780_v37, 0.0 }
 0x1e4   :  { %v830_v21 = vpack.c.bf16 %v814_v61, %v813_v1 }
 0x1e6   :  { %1595 = vmatmul.mubr.bf16.gmra.mrb[12].mxu1 %v830_v21 }
 0x1e7   :  { %1111 = vmatprep.mubr.bf16.mxu1 %v1863_v28 }
 0x247   :  { %v1568_v31 = vpop.f32.mrb[64].mxu0 }
 0x248   :  { %v929_v8 = vpop.f32.mrb[65].mxu0 }
 0x249   :  { %v1569_v26 = vpop.f32.mrb[66].mxu0 }
 0x24a   :  { %v1057_v4 = vpack.c.bf16 %v1569_v26, %v1568_v31  ;;  %v932_v44 = vpop.f32.mrb[67].mxu0 }
 0x24b   :  { %v1056_v20 = vpack.c.bf16 %v932_v44, %v929_v8 }
 0x257   :  { %v1572_v3 = vpop.f32.mrb[68].mxu0 }
 0x258   :  { %v945_v25 = vpop.f32.mrb[69].mxu0 }
 0x259   :  { %v1573_v27 = vpop.f32.mrb[70].mxu0 }
 0x25a   :  { %v1059_v15 = vpack.c.bf16 %v1573_v27, %v1572_v3  ;;  %v948_v23 = vpop.f32.mrb[71].mxu0 }
 0x25b   :  { %v1058_v17 = vpack.c.bf16 %v948_v23, %v945_v25 }
 0x267   :  { %v1576_v48 = vpop.f32.mrb[72].mxu0 }
 0x268   :  { %v961_v46 = vpop.f32.mrb[73].mxu0 }
 0x269   :  { %v1577_v13 = vpop.f32.mrb[74].mxu0 }
 0x26a   :  { %v1061_v36 = vpack.c.bf16 %v1577_v13, %v1576_v48  ;;  %v964_v0 = vpop.f32.mrb[75].mxu0 }
 0x26b   :  { %v1060_v6 = vpack.c.bf16 %v964_v0, %v961_v46 }
 0x279   :  { %v1580_v18 = vpop.f32.mrb[76].mxu0 }
 0x27a   :  { %v977_v28 = vpop.f32.mrb[77].mxu0 }
 0x27b   :  { %v1581_v57 = vpop.f32.mrb[78].mxu0 }
 0x27c   :  { %v1063_v34 = vpack.c.bf16 %v1581_v57, %v1580_v18  ;;  %v980_v19 = vpop.f32.mrb[79].mxu0 }
 0x27d   :  { %v1062_v42 = vpack.c.bf16 %v980_v19, %v977_v28 }
 0x289   :  { %v1584_v53 = vpop.f32.mrb[0].mxu1 }
 0x28a   :  { %v993_v24 = vpop.f32.mrb[1].mxu1 }
 0x28b   :  { %v1585_v5 = vpop.f32.mrb[2].mxu1 }
 0x28c   :  { %v1065_v50 = vpack.c.bf16 %v1585_v5, %v1584_v53  ;;  %v996_v41 = vpop.f32.mrb[3].mxu1 }
 0x28d   :  { %v1064_v37 = vpack.c.bf16 %v996_v41, %v993_v24 }
 0x28f   :  { %1438 = vmatprep.subr.bf16.mxu1 %v1064_v37 }
 0x290   :  { %1439 = vmatpush3.bf16.msra.mxu1 %v1056_v20 }
 0x291   :  { %1440 = vmatprep.subr.bf16.mxu1 %v1065_v50 }
 0x294   :  { %1441 = vmatpush3.bf16.msra.mxu1 %v1057_v4 }
 0x299   :  { %v1588_v1 = vpop.f32.mrb[4].mxu1 }
 0x29a   :  { %v1009_v61 = vpop.f32.mrb[5].mxu1 }
 0x29b   :  { %v1589_v21 = vpop.f32.mrb[6].mxu1 }
 0x29c   :  { %v1067_v31 = vpack.c.bf16 %v1589_v21, %v1588_v1  ;;  %v1012_v8 = vpop.f32.mrb[7].mxu1 }
 0x29d   :  { %v1066_v26 = vpack.c.bf16 %v1012_v8, %v1009_v61 }
 0x29f   :  { %1442 = vmatprep.subr.bf16.mxu1 %v1066_v26 }
 0x2a0   :  { %1443 = vmatpush3.bf16.msra.mxu1 %v1058_v17 }
 0x2a1   :  { %1444 = vmatprep.subr.bf16.mxu1 %v1067_v31 }
 0x2a4   :  { %1445 = vmatpush3.bf16.msra.mxu1 %v1059_v15 }
 0x2a9   :  { %v1592_v44 = vpop.f32.mrb[8].mxu1 }
 0x2aa   :  { %v1025_v3 = vpop.f32.mrb[9].mxu1 }
 0x2ab   :  { %v1593_v25 = vpop.f32.mrb[10].mxu1 }
 0x2ac   :  { %v1069_v27 = vpack.c.bf16 %v1593_v25, %v1592_v44  ;;  %v1028_v23 = vpop.f32.mrb[11].mxu1 }
 0x2ad   :  { %v1068_v48 = vpack.c.bf16 %v1028_v23, %v1025_v3 }
 0x2af   :  { %1446 = vmatprep.subr.bf16.mxu1 %v1068_v48 }
 0x2b0   :  { %1447 = vmatpush3.bf16.msra.mxu1 %v1060_v6 }
 0x2b1   :  { %1448 = vmatprep.subr.bf16.mxu1 %v1069_v27 }
 0x2b4   :  { %1449 = vmatpush3.bf16.msra.mxu1 %v1061_v36 }
 0x2b9   :  { %v1596_v4 = vpop.f32.mrb[12].mxu1 }
 0x2ba   :  { %v1041_v20 = vpop.f32.mrb[13].mxu1 }
 0x2bb   :  { %v1597_v46 = vpop.f32.mrb[14].mxu1 }
 0x2bc   :  { %v1071_v13 = vpack.c.bf16 %v1597_v46, %v1596_v4  ;;  %v1044_v0 = vpop.f32.mrb[15].mxu1 }
 0x2bd   :  { %v1070_v18 = vpack.c.bf16 %v1044_v0, %v1041_v20 }
 0x2bf   :  { %1450 = vmatprep.subr.bf16.mxu1 %v1070_v18 }
 0x2c0   :  { %1451 = vmatpush3.bf16.msra.mxu1 %v1062_v42 }
 0x2c1   :  { %1452 = vmatprep.subr.bf16.mxu1 %v1071_v13 }
 0x2c4   :  { %1453 = vmatpush3.bf16.msra.mxu1 %v1063_v34 }
 0x2c7   :  { %1112 = vmatmul.mubr.bf16.vlgmr.msra.gmra.mrb[16].mxu1 %v1865_v29 }
 0x2c8   :  { %1119 = vmatprep.mubr.bf16.mxu1 %v1867_v30  ;;  %v2395_v30 = vld [vmem:[%s2531_s6] ss:$0 sm:$0xff] }
 0x2cf   :  { %1120 = vmatmul.mubr.bf16.gmra.mrb[20].mxu1 %v1909_v54 }
 0x2d0   :  { %1127 = vmatprep.mubr.bf16.mxu1 %v1922_v60 }
 0x2d7   :  { %1128 = vmatmul.mubr.bf16.gmra.mrb[24].mxu1 %v1997_v39 }
 0x2d8   :  { %1135 = vmatprep.mubr.bf16.mxu1 %v2016_v45 }
 0x2df   :  { %1136 = vmatmul.mubr.bf16.gmra.mrb[28].mxu1 %v2086_v43 }
 0x2e0   :  { %1143 = vmatprep.mubr.bf16.mxu1 %v2102_v2 }
 0x2e7   :  { %1144 = vmatmul.mubr.bf16.gmra.mrb[32].mxu1 %v2129_v58 }
 0x2e8   :  { %1151 = vmatprep.mubr.bf16.mxu1 %v2145_v52 }
 0x2ef   :  { %1152 = vmatmul.mubr.bf16.gmra.mrb[36].mxu1 %v2186_v51 }
 0x2f0   :  { %1159 = vmatprep.mubr.bf16.mxu1 %v2202_v33 }
 0x2f7   :  { %1160 = vmatmul.mubr.bf16.gmra.mrb[40].mxu1 %v2240_v38 }
 0x2f8   :  { %1167 = vmatprep.mubr.bf16.mxu1 %v2257_v40 }
 0x2ff   :  { %1168 = vmatmul.mubr.bf16.gmra.mrb[44].mxu1 %v2283_v49 }
 0x300   :  { %1175 = vmatprep.mubr.bf16.mxu1 %v2285_v12 }
 0x307   :  { %1176 = vmatmul.mubr.bf16.gmra.mrb[48].mxu1 %v2291_v7 }
 0x308   :  { %1183 = vmatprep.mubr.bf16.mxu1 %v2131_v10 }
 0x30f   :  { %1184 = vmatmul.mubr.bf16.gmra.mrb[52].mxu1 %v2133_v35 }
 0x310   :  { %1191 = vmatprep.mubr.bf16.mxu1 %v2158_v56 }
 0x317   :  { %1192 = vmatmul.mubr.bf16.gmra.mrb[56].mxu1 %v2160_v62 }
 0x318   :  { %1199 = vmatprep.mubr.bf16.mxu1 %v2188_v55 }
 0x31f   :  { %1200 = vmatmul.mubr.bf16.gmra.mrb[60].mxu1 %v2190_v9 }
 0x320   :  { %1207 = vmatprep.mubr.bf16.mxu1 %v2216_v59 }
 0x327   :  { %1208 = vmatmul.mubr.bf16.gmra.mrb[64].mxu1 %v2218_v16 }
 0x328   :  { %1215 = vmatprep.mubr.bf16.mxu1 %v2242_v11 }
 0x32f   :  { %1216 = vmatmul.mubr.bf16.gmra.mrb[68].mxu1 %v2244_v63 }
 0x330   :  { %1223 = vmatprep.mubr.bf16.mxu1 %v2265_v32 }
 0x337   :  { %1224 = vmatmul.mubr.bf16.gmra.mrb[72].mxu1 %v2267_v14 }
 0x338   :  { %1231 = vmatprep.mubr.bf16.mxu1 %v2275_v47 }
 0x33f   :  { %1232 = vmatmul.mubr.bf16.gmra.mrb[76].mxu1 %v2277_v22 }
 0x39a   :  { %v1454_v29 = vpop.f32.mrb[16].mxu1 }
 0x39b   :  { %v1455_v54 = vpop.f32.mrb[17].mxu1 }
 0x39c   :  { %v1456_v60 = vadd.f32 %v1455_v54, %v1454_v29  ;;  %v1457_v39 = vpop.f32.mrb[18].mxu1 }
 0x39d   :  { %v1458_v45 = vpop.f32.mrb[19].mxu1 }
 0x39e   :  { %v1114_v43 = vadd.f32 %v1456_v60, %v2395_v30  ;;  %v1459_v2 = vadd.f32 %v1458_v45, %v1457_v39 }
 0x3a0   :  { %1240 = vst [vmem:[%s2532_s7] sm:$0xff] %v1114_v43  ;;  %v1117_v58 = vadd.f32 %v1459_v2, %v2395_v30 }
 0x3a2   :  { %1241 = vst [vmem:[%s2532_s7 + $0x8] sm:$0xff] %v1117_v58  ;;  %v1460_v10 = vpop.f32.mrb[20].mxu1 }
 0x3a3   :  { %v1461_v35 = vpop.f32.mrb[21].mxu1 }
 0x3a4   :  { %v1462_v52 = vadd.f32 %v1461_v35, %v1460_v10  ;;  %v1463_v56 = vpop.f32.mrb[22].mxu1 }
 0x3a5   :  { %v1464_v62 = vpop.f32.mrb[23].mxu1 }
 0x3a6   :  { %v1122_v51 = vadd.f32 %v1462_v52, %v2395_v30  ;;  %v1465_v55 = vadd.f32 %v1464_v62, %v1463_v56 }
 0x3a8   :  { %1242 = vst [vmem:[%s2532_s7 + $0x10] sm:$0xff] %v1122_v51  ;;  %v1125_v9 = vadd.f32 %v1465_v55, %v2395_v30 }
 0x3aa   :  { %1243 = vst [vmem:[%s2532_s7 + $0x18] sm:$0xff] %v1125_v9  ;;  %v1466_v33 = vpop.f32.mrb[24].mxu1 }
 0x3ab   :  { %v1467_v59 = vpop.f32.mrb[25].mxu1 }
 0x3ac   :  { %v1468_v16 = vadd.f32 %v1467_v59, %v1466_v33  ;;  %v1469_v38 = vpop.f32.mrb[26].mxu1 }
 0x3ad   :  { %v1470_v11 = vpop.f32.mrb[27].mxu1 }
 0x3ae   :  { %v1130_v63 = vadd.f32 %v1468_v16, %v2395_v30  ;;  %v1471_v40 = vadd.f32 %v1470_v11, %v1469_v38 }
 0x3b0   :  { %1244 = vst [vmem:[%s2532_s7 + $0x20] sm:$0xff] %v1130_v63  ;;  %v1133_v32 = vadd.f32 %v1471_v40, %v2395_v30 }
 0x3b2   :  { %1245 = vst [vmem:[%s2532_s7 + $0x28] sm:$0xff] %v1133_v32  ;;  %v1472_v14 = vpop.f32.mrb[28].mxu1 }
 0x3b3   :  { %v1473_v47 = vpop.f32.mrb[29].mxu1 }
 0x3b4   :  { %v1474_v22 = vadd.f32 %v1473_v47, %v1472_v14  ;;  %v1475_v49 = vpop.f32.mrb[30].mxu1 }
 0x3b5   :  { %v1476_v12 = vpop.f32.mrb[31].mxu1 }
 0x3b6   :  { %v1138_v7 = vadd.f32 %v1474_v22, %v2395_v30  ;;  %v1477_v15 = vadd.f32 %v1476_v12, %v1475_v49 }
 0x3b8   :  { %1246 = vst [vmem:[%s2532_s7 + $0x30] sm:$0xff] %v1138_v7  ;;  %v1141_v17 = vadd.f32 %v1477_v15, %v2395_v30 }
 0x3ba   :  { %1247 = vst [vmem:[%s2532_s7 + $0x38] sm:$0xff] %v1141_v17  ;;  %v1478_v36 = vpop.f32.mrb[32].mxu1 }
 0x3bb   :  { %v1479_v6 = vpop.f32.mrb[33].mxu1 }
 0x3bc   :  { %v1480_v28 = vadd.f32 %v1479_v6, %v1478_v36  ;;  %v1481_v57 = vpop.f32.mrb[34].mxu1 }
 0x3bd   :  { %v1482_v34 = vpop.f32.mrb[35].mxu1 }
 0x3be   :  { %v1146_v19 = vadd.f32 %v1480_v28, %v2395_v30  ;;  %v1483_v42 = vadd.f32 %v1482_v34, %v1481_v57 }
 0x3c0   :  { %1248 = vst [vmem:[%s2532_s7 + $0x40] sm:$0xff] %v1146_v19  ;;  %v1149_v53 = vadd.f32 %v1483_v42, %v2395_v30 }
 0x3c2   :  { %1249 = vst [vmem:[%s2532_s7 + $0x48] sm:$0xff] %v1149_v53  ;;  %v1484_v24 = vpop.f32.mrb[36].mxu1 }
 0x3c3   :  { %v1485_v5 = vpop.f32.mrb[37].mxu1 }
 0x3c4   :  { %v1486_v50 = vadd.f32 %v1485_v5, %v1484_v24  ;;  %v1487_v41 = vpop.f32.mrb[38].mxu1 }
 0x3c5   :  { %v1488_v37 = vpop.f32.mrb[39].mxu1 }
 0x3c6   :  { %v1154_v1 = vadd.f32 %v1486_v50, %v2395_v30  ;;  %v1489_v61 = vadd.f32 %v1488_v37, %v1487_v41 }
 0x3c8   :  { %1250 = vst [vmem:[%s2532_s7 + $0x50] sm:$0xff] %v1154_v1  ;;  %v1157_v21 = vadd.f32 %v1489_v61, %v2395_v30 }
 0x3ca   :  { %1251 = vst [vmem:[%s2532_s7 + $0x58] sm:$0xff] %v1157_v21  ;;  %v1490_v31 = vpop.f32.mrb[40].mxu1 }
 0x3cb   :  { %v1491_v8 = vpop.f32.mrb[41].mxu1 }
 0x3cc   :  { %v1492_v26 = vadd.f32 %v1491_v8, %v1490_v31  ;;  %v1493_v44 = vpop.f32.mrb[42].mxu1 }
 0x3cd   :  { %v1494_v3 = vpop.f32.mrb[43].mxu1 }
 0x3ce   :  { %v1162_v25 = vadd.f32 %v1492_v26, %v2395_v30  ;;  %v1495_v27 = vadd.f32 %v1494_v3, %v1493_v44 }
 0x3d0   :  { %1252 = vst [vmem:[%s2532_s7 + $0x60] sm:$0xff] %v1162_v25  ;;  %v1165_v23 = vadd.f32 %v1495_v27, %v2395_v30 }
 0x3d2   :  { %1253 = vst [vmem:[%s2532_s7 + $0x68] sm:$0xff] %v1165_v23  ;;  %v1496_v48 = vpop.f32.mrb[44].mxu1 }
 0x3d3   :  { %v1497_v4 = vpop.f32.mrb[45].mxu1 }
 0x3d4   :  { %v1498_v20 = vadd.f32 %v1497_v4, %v1496_v48  ;;  %v1499_v46 = vpop.f32.mrb[46].mxu1 }
 0x3d5   :  { %v1500_v13 = vpop.f32.mrb[47].mxu1 }
 0x3d6   :  { %v1170_v0 = vadd.f32 %v1498_v20, %v2395_v30  ;;  %v1501_v18 = vadd.f32 %v1500_v13, %v1499_v46 }
 0x3d8   :  { %1254 = vst [vmem:[%s2532_s7 + $0x70] sm:$0xff] %v1170_v0  ;;  %v1173_v29 = vadd.f32 %v1501_v18, %v2395_v30 }
 0x3da   :  { %1255 = vst [vmem:[%s2532_s7 + $0x78] sm:$0xff] %v1173_v29  ;;  %v1502_v54 = vpop.f32.mrb[48].mxu1 }
 0x3db   :  { %v1503_v60 = vpop.f32.mrb[49].mxu1 }
 0x3dc   :  { %v1504_v39 = vadd.f32 %v1503_v60, %v1502_v54  ;;  %v1505_v45 = vpop.f32.mrb[50].mxu1 }
 0x3dd   :  { %v1506_v43 = vpop.f32.mrb[51].mxu1 }
 0x3de   :  { %v1178_v2 = vadd.f32 %v1504_v39, %v2395_v30  ;;  %v1507_v58 = vadd.f32 %v1506_v43, %v1505_v45 }
 0x3e0   :  { %1256 = vst [vmem:[%s2532_s7 + $0x80] sm:$0xff] %v1178_v2  ;;  %v1181_v10 = vadd.f32 %v1507_v58, %v2395_v30 }
 0x3e2   :  { %1257 = vst [vmem:[%s2532_s7 + $0x88] sm:$0xff] %v1181_v10  ;;  %v1508_v35 = vpop.f32.mrb[52].mxu1 }
 0x3e3   :  { %v1509_v52 = vpop.f32.mrb[53].mxu1 }
 0x3e4   :  { %v1510_v56 = vadd.f32 %v1509_v52, %v1508_v35  ;;  %v1511_v62 = vpop.f32.mrb[54].mxu1 }
 0x3e5   :  { %v1512_v51 = vpop.f32.mrb[55].mxu1 }
 0x3e6   :  { %v1186_v55 = vadd.f32 %v1510_v56, %v2395_v30  ;;  %v1513_v9 = vadd.f32 %v1512_v51, %v1511_v62 }
 0x3e8   :  { %1258 = vst [vmem:[%s2532_s7 + $0x90] sm:$0xff] %v1186_v55  ;;  %v1189_v33 = vadd.f32 %v1513_v9, %v2395_v30 }
 0x3ea   :  { %1259 = vst [vmem:[%s2532_s7 + $0x98] sm:$0xff] %v1189_v33  ;;  %v1514_v59 = vpop.f32.mrb[56].mxu1 }
 0x3eb   :  { %v1515_v16 = vpop.f32.mrb[57].mxu1 }
 0x3ec   :  { %v1516_v38 = vadd.f32 %v1515_v16, %v1514_v59  ;;  %v1517_v11 = vpop.f32.mrb[58].mxu1 }
 0x3ed   :  { %v1518_v63 = vpop.f32.mrb[59].mxu1 }
 0x3ee   :  { %v1194_v40 = vadd.f32 %v1516_v38, %v2395_v30  ;;  %v1519_v32 = vadd.f32 %v1518_v63, %v1517_v11 }
 0x3f0   :  { %1260 = vst [vmem:[%s2532_s7 + $0xa0] sm:$0xff] %v1194_v40  ;;  %v1197_v14 = vadd.f32 %v1519_v32, %v2395_v30 }
 0x3f2   :  { %1261 = vst [vmem:[%s2532_s7 + $0xa8] sm:$0xff] %v1197_v14  ;;  %v1520_v47 = vpop.f32.mrb[60].mxu1 }
 0x3f3   :  { %v1521_v22 = vpop.f32.mrb[61].mxu1 }
 0x3f4   :  { %v1522_v49 = vadd.f32 %v1521_v22, %v1520_v47  ;;  %v1523_v12 = vpop.f32.mrb[62].mxu1 }
 0x3f5   :  { %v1524_v7 = vpop.f32.mrb[63].mxu1 }
 0x3f6   :  { %v1202_v15 = vadd.f32 %v1522_v49, %v2395_v30  ;;  %v1525_v17 = vadd.f32 %v1524_v7, %v1523_v12 }
 0x3f8   :  { %1262 = vst [vmem:[%s2532_s7 + $0xb0] sm:$0xff] %v1202_v15  ;;  %v1205_v36 = vadd.f32 %v1525_v17, %v2395_v30 }
 0x3fa   :  { %1263 = vst [vmem:[%s2532_s7 + $0xb8] sm:$0xff] %v1205_v36  ;;  %v1526_v6 = vpop.f32.mrb[64].mxu1 }
 0x3fb   :  { %v1527_v28 = vpop.f32.mrb[65].mxu1 }
 0x3fc   :  { %v1528_v57 = vadd.f32 %v1527_v28, %v1526_v6  ;;  %v1529_v34 = vpop.f32.mrb[66].mxu1 }
 0x3fd   :  { %v1530_v19 = vpop.f32.mrb[67].mxu1 }
 0x3fe   :  { %v1210_v42 = vadd.f32 %v1528_v57, %v2395_v30  ;;  %v1531_v53 = vadd.f32 %v1530_v19, %v1529_v34 }
 0x400   :  { %1264 = vst [vmem:[%s2532_s7 + $0xc0] sm:$0xff] %v1210_v42  ;;  %v1213_v24 = vadd.f32 %v1531_v53, %v2395_v30 }
 0x402   :  { %1265 = vst [vmem:[%s2532_s7 + $0xc8] sm:$0xff] %v1213_v24  ;;  %v1532_v5 = vpop.f32.mrb[68].mxu1 }
 0x403   :  { %v1533_v50 = vpop.f32.mrb[69].mxu1 }
 0x404   :  { %v1534_v41 = vadd.f32 %v1533_v50, %v1532_v5  ;;  %v1535_v37 = vpop.f32.mrb[70].mxu1 }
 0x405   :  { %v1536_v1 = vpop.f32.mrb[71].mxu1 }
 0x406   :  { %v1218_v61 = vadd.f32 %v1534_v41, %v2395_v30  ;;  %v1537_v21 = vadd.f32 %v1536_v1, %v1535_v37 }
 0x408   :  { %1266 = vst [vmem:[%s2532_s7 + $0xd0] sm:$0xff] %v1218_v61  ;;  %v1221_v31 = vadd.f32 %v1537_v21, %v2395_v30 }
 0x40a   :  { %1267 = vst [vmem:[%s2532_s7 + $0xd8] sm:$0xff] %v1221_v31  ;;  %v1538_v8 = vpop.f32.mrb[72].mxu1 }
 0x40b   :  { %v1539_v26 = vpop.f32.mrb[73].mxu1 }
 0x40c   :  { %v1540_v44 = vadd.f32 %v1539_v26, %v1538_v8  ;;  %v1541_v3 = vpop.f32.mrb[74].mxu1 }
 0x40d   :  { %v1542_v25 = vpop.f32.mrb[75].mxu1 }
 0x40e   :  { %v1226_v27 = vadd.f32 %v1540_v44, %v2395_v30  ;;  %v1543_v23 = vadd.f32 %v1542_v25, %v1541_v3 }
 0x410   :  { %1268 = vst [vmem:[%s2532_s7 + $0xe0] sm:$0xff] %v1226_v27  ;;  %v1229_v48 = vadd.f32 %v1543_v23, %v2395_v30 }
 0x412   :  { %1269 = vst [vmem:[%s2532_s7 + $0xe8] sm:$0xff] %v1229_v48  ;;  %v1544_v4 = vpop.f32.mrb[76].mxu1 }
 0x413   :  { %v1545_v20 = vpop.f32.mrb[77].mxu1 }
 0x414   :  { %v1546_v46 = vadd.f32 %v1545_v20, %v1544_v4  ;;  %v1547_v13 = vpop.f32.mrb[78].mxu1 }
 0x415   :  { %v1548_v0 = vpop.f32.mrb[79].mxu1 }
 0x416   :  { %v1234_v18 = vadd.f32 %v1546_v46, %v2395_v30  ;;  %v1549_v29 = vadd.f32 %v1548_v0, %v1547_v13 }
 0x418   :  { %1270 = vst [vmem:[%s2532_s7 + $0xf0] sm:$0xff] %v1234_v18  ;;  %v1237_v54 = vadd.f32 %v1549_v29, %v2395_v30 }
 0x41a   :  { %1271 = vst [vmem:[%s2532_s7 + $0xf8] sm:$0xff] %v1237_v54 }

</bundles_post_ra>
